<compile_context>
chip_gen: v6e
topology: v6e:2x2x1
jax: 0.10.0
libtpu: 0.0.40
codegen_flags: <defaults>
</compile_context>

<pallas_src>
import jax
import jax.numpy as jnp
from jax.experimental import pallas as pl
from jax.experimental.pallas import tpu as pltpu

LATENT = 128
EPS = 1e-5
NEG_SLOPE = 0.1
LANE = 128


def _round_up(n, m):
    return ((n + m - 1) // m) * m


def _leaky(x):
    return jnp.where(x > 0, x, NEG_SLOPE * x)


# --------------------------------------------------------------------------
# Hidden pass: h_out = LeakyReLU(W @ h_in + b); accumulate BN stats across
# batch tiles; on the last tile fold the BN affine into the next layer's
# (W_next, b_next) -> (W_fold bf16, b_fold f32).
# --------------------------------------------------------------------------
def _make_hidden_kernel(*, first, n_valid, tb, n_tiles):
    last_valid = n_valid - (n_tiles - 1) * tb
    has_pad = last_valid != tb
    inv_n = 1.0 / float(n_valid)

    def kernel(hin_ref, w_ref, b_ref, wnext_ref, bnext_ref, g_ref, be_ref,
               hout_ref, wfold_ref, bfold_ref, sum_ref, ssq_ref):
        i = pl.program_id(0)

        @pl.when(i == 0)
        def _():
            sum_ref[...] = jnp.zeros_like(sum_ref)
            ssq_ref[...] = jnp.zeros_like(ssq_ref)

        if first:
            # x tile arrives batch-major (tb, 128) f32: cast + contract on the
            # minor dims (== W @ x^T) so the transpose never materializes and
            # no wrapper-side transpose/cast is needed.
            y = jax.lax.dot_general(
                w_ref[...], hin_ref[...].astype(jnp.bfloat16),
                (((1,), (1,)), ((), ())),
                preferred_element_type=jnp.float32)
        else:
            # h_in is already the transposed bf16 activation (128, tb).
            y = jnp.dot(w_ref[...], hin_ref[...],
                        preferred_element_type=jnp.float32)
        y = y + b_ref[...]                               # (128, tb) f32
        h = jnp.where(y > 0, y, NEG_SLOPE * y)           # LeakyReLU, f32 (v5e-safe)
        hout_ref[...] = h.astype(jnp.bfloat16)           # bf16 inter-layer activation

        # Single-pass stats: sum and sum-of-squares per feature, f32 accum.
        # NOTE: var = E[h^2] - mean^2 is cancellation-prone for |mean|>>std;
        # fine here (normalized net, f32 accumulators, 1e-2-level tolerance).
        def accumulate(hv):
            sum_ref[...] += jnp.sum(hv, axis=1, keepdims=True)
            ssq_ref[...] += jnp.sum(hv * hv, axis=1, keepdims=True)

        if has_pad:
            # Only the final tile is ragged: mask just there.  Padded columns
            # never reach the stats and the wrapper slices them off the output.
            @pl.when(i < n_tiles - 1)
            def _():
                accumulate(h)

            @pl.when(i == n_tiles - 1)
            def _():
                col = jax.lax.broadcasted_iota(jnp.int32, h.shape, 1)
                accumulate(jnp.where(col < last_valid, h, 0.0))
        else:
            accumulate(h)

        # Last tile: full-batch stats are complete -> fold this BN into the
        # NEXT layer (batch-independent O(128^2) work, done once per pass).
        @pl.when(i == n_tiles - 1)
        def _():
            mean = sum_ref[...] * inv_n                          # (128, 1)
            var = ssq_ref[...] * inv_n - mean * mean             # biased var
            scale = g_ref[...] * jax.lax.rsqrt(var + EPS)        # (128, 1)
            shift = be_ref[...] - mean * scale                   # (128, 1)
            wn = wnext_ref[...]                                  # (128, 128) f32
            # W'[o, j] = Wn[o, j] * scale[j]  ==  Wn @ diag(scale)
            r = jax.lax.broadcasted_iota(jnp.int32, (LATENT, LATENT), 0)
            c = jax.lax.broadcasted_iota(jnp.int32, (LATENT, LATENT), 1)
            dmat = jnp.where(r == c, scale, 0.0)                 # diag(scale)
            wfold_ref[...] = jnp.dot(
                wn, dmat, preferred_element_type=jnp.float32).astype(jnp.bfloat16)
            # b' = b_next + Wn @ shift  (shift broadcast so the matmul stays
            # a well-supported 128x128x128 shape; all columns are identical).
            shift_b = jnp.broadcast_to(shift, (LATENT, LATENT))
            wn_shift = jnp.dot(wn, shift_b,
                               preferred_element_type=jnp.float32)[:, 0:1]
            bfold_ref[...] = bnext_ref[...] + wn_shift

    return kernel


def _hidden_pass(h_in, w_cur, b_cur, w_next, b_next, gamma, beta, *,
                 n_valid, tb, first):
    n_tiles = (h_in.shape[0] if first else h_in.shape[1]) // tb
    bp = n_tiles * tb

    if first:
        in_spec_h = pl.BlockSpec((tb, LATENT), lambda i: (i, 0))
        in_bytes = bp * LATENT * 4
    else:
        in_spec_h = pl.BlockSpec((LATENT, tb), lambda i: (0, i))
        in_bytes = bp * LATENT * 2

    resident_mat = pl.BlockSpec((LATENT, LATENT), lambda i: (0, 0))
    resident_col = pl.BlockSpec((LATENT, 1), lambda i: (0, 0))

    kernel = _make_hidden_kernel(first=first, n_valid=n_valid, tb=tb,
                                 n_tiles=n_tiles)

    cost = pl.CostEstimate(
        flops=int(2 * LATENT * LATENT * bp + 4 * LATENT ** 3),
        transcendentals=int(LATENT),
        bytes_accessed=int(in_bytes + bp * LATENT * 2 + LATENT * LATENT * 8))

    h_out, w_fold, b_fold = pl.pallas_call(
        kernel,
        grid=(n_tiles,),
        in_specs=[in_spec_h, resident_mat, resident_col, resident_mat,
                  resident_col, resident_col, resident_col],
        out_specs=(pl.BlockSpec((LATENT, tb), lambda i: (0, i)),
                   resident_mat, resident_col),
        out_shape=(jax.ShapeDtypeStruct((LATENT, bp), jnp.bfloat16),
                   jax.ShapeDtypeStruct((LATENT, LATENT), jnp.bfloat16),
                   jax.ShapeDtypeStruct((LATENT, 1), jnp.float32)),
        scratch_shapes=[pltpu.VMEM((LATENT, 1), jnp.float32),
                        pltpu.VMEM((LATENT, 1), jnp.float32)],
        compiler_params=pltpu.CompilerParams(
            # Stats accumulate across batch tiles -> sequential axis.
            dimension_semantics=("arbitrary",),
            # Modest cap (per-step working set ~1-2 MiB); <= v7x guidance.
            vmem_limit_bytes=32 * 1024 * 1024),
        cost_estimate=cost,
    )(h_in, w_cur, b_cur, w_next, b_next, gamma, beta)
    return h_out, w_fold, b_fold


# --------------------------------------------------------------------------
# Final pass: LeakyReLU(W4' @ h + b4') then the 128->1 projection as a VPU
# multiply + sublane reduce, producing a lane-dense (1, Bp) output.
# --------------------------------------------------------------------------
def _final_kernel(hin_ref, w_ref, b_ref, w5_ref, b5_ref, out_ref):
    y = jnp.dot(w_ref[...], hin_ref[...], preferred_element_type=jnp.float32)
    y = y + b_ref[...]
    h = jnp.where(y > 0, y, NEG_SLOPE * y)                       # (128, tb) f32
    out = jnp.sum(h * w5_ref[...], axis=0, keepdims=True) + b5_ref[...]
    out_ref[...] = out.astype(out_ref.dtype)


def _final_pass(h_in, w_cur, b_cur, w5, b5, *, tb):
    n_tiles = h_in.shape[1] // tb
    bp = n_tiles * tb
    resident_mat = pl.BlockSpec((LATENT, LATENT), lambda i: (0, 0))
    resident_col = pl.BlockSpec((LATENT, 1), lambda i: (0, 0))
    cost = pl.CostEstimate(
        flops=int(2 * LATENT * LATENT * bp + 3 * LATENT * bp),
        transcendentals=0,
        bytes_accessed=int(bp * LATENT * 2 + bp * 4 + LATENT * LATENT * 2))

    return pl.pallas_call(
        _final_kernel,
        grid=(n_tiles,),
        in_specs=[pl.BlockSpec((LATENT, tb), lambda i: (0, i)),
                  resident_mat, resident_col, resident_col,
                  pl.BlockSpec((1, 1), lambda i: (0, 0))],
        out_specs=pl.BlockSpec((1, tb), lambda i: (0, i)),
        out_shape=jax.ShapeDtypeStruct((1, bp), jnp.float32),
        compiler_params=pltpu.CompilerParams(
            dimension_semantics=("parallel",),       # tiles independent
            vmem_limit_bytes=32 * 1024 * 1024),
        cost_estimate=cost,
    )(h_in, w_cur, b_cur, w5, b5)


# --------------------------------------------------------------------------
# Parameters / wrapper
# --------------------------------------------------------------------------
def spectral_normalize(w):
    # Exact spectral norm (largest singular value), deterministic.
    sigma = jnp.linalg.norm(w, ord=2)
    return w / sigma


def init_params(key, latent=LATENT):
    keys = jax.random.split(key, 16)
    bound = 1.0 / jnp.sqrt(latent)

    def make_linear(kw, kb, in_dim, out_dim):
        w = jax.random.uniform(kw, (out_dim, in_dim), jnp.float32, -bound, bound)
        b = jax.random.uniform(kb, (out_dim,), jnp.float32, -bound, bound)
        return spectral_normalize(w), b.reshape(out_dim, 1)

    p = {}
    w1, p["b1"] = make_linear(keys[0], keys[1], latent, latent)
    p["w1"] = w1.astype(jnp.bfloat16)               # first layer: MXU-ready bf16
    p["w2"], p["b2"] = make_linear(keys[2], keys[3], latent, latent)  # f32 masters:
    p["w3"], p["b3"] = make_linear(keys[4], keys[5], latent, latent)  # folded + cast
    p["w4"], p["b4"] = make_linear(keys[6], keys[7], latent, latent)  # to bf16 in-kernel
    w5, b5 = make_linear(keys[8], keys[9], latent, 1)
    p["w5"] = w5.T                                   # (128, 1) column (VPU projection)
    p["b5"] = b5.reshape(1, 1)

    # BatchNorm affine (PyTorch default gamma=1, beta=0) perturbed slightly so
    # the affine path is exercised.
    for i, (kg, kb2) in enumerate(((keys[10], keys[11]), (keys[12], keys[13]),
                                   (keys[14], keys[15])), start=1):
        p[f"g{i}"] = (1.0 + 0.01 * jax.random.normal(kg, (latent, 1))).astype(jnp.float32)
        p[f"be{i}"] = (0.01 * jax.random.normal(kb2, (latent, 1))).astype(jnp.float32)
    return p


def text_latent_d(x, params, *, tb=512):
    """x: (B, 128) float32 -> (B,) float32."""
    B, D = x.shape
    assert D == LATENT
    tb = max(LANE, min(tb, _round_up(B, LANE)))
    assert tb % LANE == 0
    n_tiles = -(-B // tb)
    bp = n_tiles * tb
    if bp != B:
        # Only remaining wrapper-side op; cast/transpose happen inside pass 1.
        x = jnp.pad(x, ((0, bp - B), (0, 0)))

    h1, w2f, b2f = _hidden_pass(x, params["w1"], params["b1"],
                                params["w2"], params["b2"],
                                params["g1"], params["be1"],
                                n_valid=B, tb=tb, first=True)
    h2, w3f, b3f = _hidden_pass(h1, w2f, b2f,
                                params["w3"], params["b3"],
                                params["g2"], params["be2"],
                                n_valid=B, tb=tb, first=False)
    h3, w4f, b4f = _hidden_pass(h2, w3f, b3f,
                                params["w4"], params["b4"],
                                params["g3"], params["be3"],
                                n_valid=B, tb=tb, first=False)
    out = _final_pass(h3, w4f, b4f, params["w5"], params["b5"], tb=tb)
    return out[0, :B]                                # .view(-1)


def reference_forward(x, params):
    """Pure-JAX reference (standard (B, features) layout, same mixed precision,
    BN applied the conventional way — independent of the in-kernel fold)."""
    def lin(h, w, b):
        return jnp.dot(h.astype(jnp.bfloat16), w.astype(jnp.bfloat16).T,
                       preferred_element_type=jnp.float32) + b.T

    def bn(h, g, be):
        mean = jnp.mean(h, axis=0, keepdims=True)
        var = jnp.mean(h * h, axis=0, keepdims=True) - mean * mean
        return g.T * (h - mean) * jax.lax.rsqrt(var + EPS) + be.T

    h = bn(_leaky(lin(x, params["w1"], params["b1"])), params["g1"], params["be1"])
    h = bn(_leaky(lin(h, params["w2"], params["b2"])), params["g2"], params["be2"])
    h = bn(_leaky(lin(h, params["w3"], params["b3"])), params["g3"], params["be3"])
    h = _leaky(lin(h, params["w4"], params["b4"]))
    return (h @ params["w5"] + params["b5"][0, 0]).reshape(-1)


if __name__ == "__main__":
    key = jax.random.PRNGKey(0)
    k_params, k_x = jax.random.split(key)
    params = init_params(k_params, LATENT)

    # Small test shapes: tb=128 so the grid has several tiles.
    #   B=512 -> 4 exact tiles (unmasked path); B=300 -> 3 tiles, ragged last.
    for B in (512, 300):
        kx = jax.random.fold_in(k_x, B)
        x = jax.random.normal(kx, (B, LATENT), jnp.float32)

        out = jax.block_until_ready(text_latent_d(x, params, tb=128))
        ref = reference_forward(x, params)

        assert out.shape == (B,)
        max_err = float(jnp.max(jnp.abs(out - ref)))
        rel_l2 = float(jnp.linalg.norm(out - ref) / (jnp.linalg.norm(ref) + 1e-12))
        assert jnp.allclose(out, ref, atol=3e-2, rtol=3e-2), (B, max_err)
        assert rel_l2 < 5e-2, (B, rel_l2)

    print("KERNEL_OK")
</pallas_src>

<mosaic_0001>
module attributes {stable_mosaic.version = 11 : i64} {
  func.func @kernel(%arg0: i32, %arg1: memref<128x128xf32, #tpu.memory_space<vmem>>, %arg2: memref<128x128xbf16, #tpu.memory_space<vmem>>, %arg3: memref<128x1xf32, #tpu.memory_space<vmem>>, %arg4: memref<128x128xf32, #tpu.memory_space<vmem>>, %arg5: memref<128x1xf32, #tpu.memory_space<vmem>>, %arg6: memref<128x1xf32, #tpu.memory_space<vmem>>, %arg7: memref<128x1xf32, #tpu.memory_space<vmem>>, %arg8: memref<128x128xbf16, #tpu.memory_space<vmem>>, %arg9: memref<128x128xbf16, #tpu.memory_space<vmem>>, %arg10: memref<128x1xf32, #tpu.memory_space<vmem>>, %arg11: memref<128x1xf32, #tpu.memory_space<vmem>>, %arg12: memref<128x1xf32, #tpu.memory_space<vmem>>) attributes {dimension_semantics = [#tpu.dimension_semantics<arbitrary>], iteration_bounds = array<i64: 4>, scalar_prefetch = 0 : i64, scratch_operands = 2 : i64, tpu.core_type = #tpu.core_type<tc>, window_params = [{transform_indices = @transform_0, window_bounds = array<i64: 128, 128>}, {pipeline_mode = #tpu.pipeline_mode<synchronous>, transform_indices = @transform_1, window_bounds = array<i64: 128, 128>}, {pipeline_mode = #tpu.pipeline_mode<synchronous>, transform_indices = @transform_2, window_bounds = array<i64: 128, 1>}, {pipeline_mode = #tpu.pipeline_mode<synchronous>, transform_indices = @transform_3, window_bounds = array<i64: 128, 128>}, {pipeline_mode = #tpu.pipeline_mode<synchronous>, transform_indices = @transform_4, window_bounds = array<i64: 128, 1>}, {pipeline_mode = #tpu.pipeline_mode<synchronous>, transform_indices = @transform_5, window_bounds = array<i64: 128, 1>}, {pipeline_mode = #tpu.pipeline_mode<synchronous>, transform_indices = @transform_6, window_bounds = array<i64: 128, 1>}, {transform_indices = @transform_7, window_bounds = array<i64: 128, 128>}, {pipeline_mode = #tpu.pipeline_mode<synchronous>, transform_indices = @transform_8, window_bounds = array<i64: 128, 128>}, {pipeline_mode = #tpu.pipeline_mode<synchronous>, transform_indices = @transform_9, window_bounds = array<i64: 128, 1>}]} {
    %c0_i32 = arith.constant 0 : i32
    %0 = arith.cmpi eq, %arg0, %c0_i32 : i32
    %1 = arith.extui %0 : i1 to i32
    %c0_i32_0 = arith.constant 0 : i32
    %2 = arith.cmpi ne, %1, %c0_i32_0 : i32
    scf.if %2 {
      %cst_21 = arith.constant 0.000000e+00 : f32
      %31 = vector.broadcast %cst_21 : f32 to vector<128x1xf32>
      %c0_22 = arith.constant 0 : index
      %c0_23 = arith.constant 0 : index
      %32 = vector.load %arg11[%c0_22, %c0_23] : memref<128x1xf32, #tpu.memory_space<vmem>>, vector<128x1xf32>
      tpu.vector_store %arg11[%c0_22, %c0_23], %31 {strides = array<i32>} : memref<128x1xf32, #tpu.memory_space<vmem>>, vector<128x1xf32>,
      %cst_24 = arith.constant 0.000000e+00 : f32
      %33 = vector.broadcast %cst_24 : f32 to vector<128x1xf32>
      %c0_25 = arith.constant 0 : index
      %c0_26 = arith.constant 0 : index
      %34 = vector.load %arg12[%c0_25, %c0_26] : memref<128x1xf32, #tpu.memory_space<vmem>>, vector<128x1xf32>
      tpu.vector_store %arg12[%c0_25, %c0_26], %33 {strides = array<i32>} : memref<128x1xf32, #tpu.memory_space<vmem>>, vector<128x1xf32>,
    } else {
    }
    %c0 = arith.constant 0 : index
    %c0_1 = arith.constant 0 : index
    %3 = vector.load %arg2[%c0, %c0_1] : memref<128x128xbf16, #tpu.memory_space<vmem>>, vector<128x128xbf16>
    %c0_2 = arith.constant 0 : index
    %c0_3 = arith.constant 0 : index
    %4 = vector.load %arg1[%c0_2, %c0_3] : memref<128x128xf32, #tpu.memory_space<vmem>>, vector<128x128xf32>
    %5 = arith.truncf %4 : vector<128x128xf32> to vector<128x128xbf16>
    %cst = arith.constant dense<0.000000e+00> : vector<128x128xf32>
    %6 = tpu.matmul %3, %5, %cst {dimension_numbers = #tpu.dot_dimension_numbers<[1], [1], [0], [0], [0, 0, 1, 0], [], []>} : vector<128x128xbf16>, vector<128x128xbf16>, vector<128x128xf32> -> vector<128x128xf32>
    %c0_4 = arith.constant 0 : index
    %c0_5 = arith.constant 0 : index
    %7 = vector.load %arg3[%c0_4, %c0_5] : memref<128x1xf32, #tpu.memory_space<vmem>>, vector<128x1xf32>
    %8 = vector.broadcast %7 : vector<128x1xf32> to vector<128x128xf32>
    %9 = arith.addf %6, %8 : vector<128x128xf32>
    %cst_6 = arith.constant 0.000000e+00 : f32
    %10 = vector.broadcast %cst_6 : f32 to vector<128x128xf32>
    %11 = arith.cmpf ogt, %9, %10 : vector<128x128xf32>
    %cst_7 = arith.constant 1.000000e-01 : f32
    %12 = vector.broadcast %cst_7 : f32 to vector<128x128xf32>
    %13 = arith.mulf %12, %9 : vector<128x128xf32>
    %14 = arith.select %11, %9, %13 : vector<128x128xi1>, vector<128x128xf32>
    %15 = arith.truncf %14 : vector<128x128xf32> to vector<128x128xbf16>
    %c0_8 = arith.constant 0 : index
    %c0_9 = arith.constant 0 : index
    %16 = vector.load %arg8[%c0_8, %c0_9] : memref<128x128xbf16, #tpu.memory_space<vmem>>, vector<128x128xbf16>
    tpu.vector_store %arg8[%c0_8, %c0_9], %15 {strides = array<i32>} : memref<128x128xbf16, #tpu.memory_space<vmem>>, vector<128x128xbf16>,
    %c0_10 = arith.constant 0 : index
    %c0_11 = arith.constant 0 : index
    %17 = vector.load %arg11[%c0_10, %c0_11] : memref<128x1xf32, #tpu.memory_space<vmem>>, vector<128x1xf32>
    %cst_12 = arith.constant dense<0.000000e+00> : vector<128xf32>
    %18 = vector.multi_reduction <add>, %14, %cst_12 [1] : vector<128x128xf32> to vector<128xf32>
    %19 = vector.shape_cast %18 : vector<128xf32> to vector<128x1xf32>
    %20 = arith.addf %17, %19 : vector<128x1xf32>
    %c0_13 = arith.constant 0 : index
    %c0_14 = arith.constant 0 : index
    %21 = vector.load %arg11[%c0_13, %c0_14] : memref<128x1xf32, #tpu.memory_space<vmem>>, vector<128x1xf32>
    tpu.vector_store %arg11[%c0_13, %c0_14], %20 {strides = array<i32>} : memref<128x1xf32, #tpu.memory_space<vmem>>, vector<128x1xf32>,
    %c0_15 = arith.constant 0 : index
    %c0_16 = arith.constant 0 : index
    %22 = vector.load %arg12[%c0_15, %c0_16] : memref<128x1xf32, #tpu.memory_space<vmem>>, vector<128x1xf32>
    %23 = arith.mulf %14, %14 : vector<128x128xf32>
    %cst_17 = arith.constant dense<0.000000e+00> : vector<128xf32>
    %24 = vector.multi_reduction <add>, %23, %cst_17 [1] : vector<128x128xf32> to vector<128xf32>
    %25 = vector.shape_cast %24 : vector<128xf32> to vector<128x1xf32>
    %26 = arith.addf %22, %25 : vector<128x1xf32>
    %c0_18 = arith.constant 0 : index
    %c0_19 = arith.constant 0 : index
    %27 = vector.load %arg12[%c0_18, %c0_19] : memref<128x1xf32, #tpu.memory_space<vmem>>, vector<128x1xf32>
    tpu.vector_store %arg12[%c0_18, %c0_19], %26 {strides = array<i32>} : memref<128x1xf32, #tpu.memory_space<vmem>>, vector<128x1xf32>,
    %c3_i32 = arith.constant 3 : i32
    %28 = arith.cmpi eq, %arg0, %c3_i32 : i32
    %29 = arith.extui %28 : i1 to i32
    %c0_i32_20 = arith.constant 0 : i32
    %30 = arith.cmpi ne, %29, %c0_i32_20 : i32
    scf.if %30 {
      %c0_21 = arith.constant 0 : index
      %c0_22 = arith.constant 0 : index
      %31 = vector.load %arg11[%c0_21, %c0_22] : memref<128x1xf32, #tpu.memory_space<vmem>>, vector<128x1xf32>
      %cst_23 = arith.constant 0.001953125 : f32
      %32 = vector.broadcast %cst_23 : f32 to vector<128x1xf32>
      %33 = arith.mulf %31, %32 : vector<128x1xf32>
      %c0_24 = arith.constant 0 : index
      %c0_25 = arith.constant 0 : index
      %34 = vector.load %arg12[%c0_24, %c0_25] : memref<128x1xf32, #tpu.memory_space<vmem>>, vector<128x1xf32>
      %cst_26 = arith.constant 0.001953125 : f32
      %35 = vector.broadcast %cst_26 : f32 to vector<128x1xf32>
      %36 = arith.mulf %34, %35 : vector<128x1xf32>
      %37 = arith.mulf %33, %33 : vector<128x1xf32>
      %38 = arith.subf %36, %37 : vector<128x1xf32>
      %c0_27 = arith.constant 0 : index
      %c0_28 = arith.constant 0 : index
      %39 = vector.load %arg6[%c0_27, %c0_28] : memref<128x1xf32, #tpu.memory_space<vmem>>, vector<128x1xf32>
      %cst_29 = arith.constant 9.99999974E-6 : f32
      %40 = vector.broadcast %cst_29 : f32 to vector<128x1xf32>
      %41 = arith.addf %38, %40 : vector<128x1xf32>
      %42 = math.rsqrt %41 : vector<128x1xf32>
      %43 = arith.mulf %39, %42 : vector<128x1xf32>
      %c0_30 = arith.constant 0 : index
      %c0_31 = arith.constant 0 : index
      %44 = vector.load %arg7[%c0_30, %c0_31] : memref<128x1xf32, #tpu.memory_space<vmem>>, vector<128x1xf32>
      %45 = arith.mulf %33, %43 : vector<128x1xf32>
      %46 = arith.subf %44, %45 : vector<128x1xf32>
      %c0_32 = arith.constant 0 : index
      %c0_33 = arith.constant 0 : index
      %47 = vector.load %arg4[%c0_32, %c0_33] : memref<128x128xf32, #tpu.memory_space<vmem>>, vector<128x128xf32>
      %48 = tpu.iota {dimensions = array<i32: 0>} : vector<128x128xi32>
      %49 = tpu.iota {dimensions = array<i32: 1>} : vector<128x128xi32>
      %50 = arith.cmpi eq, %48, %49 : vector<128x128xi32>
      %cst_34 = arith.constant 0.000000e+00 : f32
      %51 = vector.shape_cast %43 : vector<128x1xf32> to vector<128x1xf32>
      %52 = vector.broadcast %51 : vector<128x1xf32> to vector<128x128xf32>
      %53 = vector.broadcast %cst_34 : f32 to vector<128x128xf32>
      %54 = arith.select %50, %52, %53 : vector<128x128xi1>, vector<128x128xf32>
      %cst_35 = arith.constant dense<0.000000e+00> : vector<128x128xf32>
      %55 = tpu.matmul %47, %54, %cst_35 {dimension_numbers = #tpu.dot_dimension_numbers<[1], [0], [0], [1], [0, 0, 1, 1], [], []>} : vector<128x128xf32>, vector<128x128xf32>, vector<128x128xf32> -> vector<128x128xf32>
      %56 = arith.truncf %55 : vector<128x128xf32> to vector<128x128xbf16>
      %c0_36 = arith.constant 0 : index
      %c0_37 = arith.constant 0 : index
      %57 = vector.load %arg9[%c0_36, %c0_37] : memref<128x128xbf16, #tpu.memory_space<vmem>>, vector<128x128xbf16>
      tpu.vector_store %arg9[%c0_36, %c0_37], %56 {strides = array<i32>} : memref<128x128xbf16, #tpu.memory_space<vmem>>, vector<128x128xbf16>,
      %58 = vector.shape_cast %46 : vector<128x1xf32> to vector<128x1xf32>
      %59 = vector.broadcast %58 : vector<128x1xf32> to vector<128x128xf32>
      %cst_38 = arith.constant dense<0.000000e+00> : vector<128x128xf32>
      %60 = tpu.matmul %47, %59, %cst_38 {dimension_numbers = #tpu.dot_dimension_numbers<[1], [0], [0], [1], [0, 0, 1, 1], [], []>} : vector<128x128xf32>, vector<128x128xf32>, vector<128x128xf32> -> vector<128x128xf32>
      %61 = vector.extract_strided_slice %60 {offsets = [0, 0], sizes = [128, 1], strides = [1, 1]} : vector<128x128xf32> to vector<128x1xf32>
      %c0_39 = arith.constant 0 : index
      %c0_40 = arith.constant 0 : index
      %62 = vector.load %arg5[%c0_39, %c0_40] : memref<128x1xf32, #tpu.memory_space<vmem>>, vector<128x1xf32>
      %63 = arith.addf %62, %61 : vector<128x1xf32>
      %c0_41 = arith.constant 0 : index
      %c0_42 = arith.constant 0 : index
      %64 = vector.load %arg10[%c0_41, %c0_42] : memref<128x1xf32, #tpu.memory_space<vmem>>, vector<128x1xf32>
      tpu.vector_store %arg10[%c0_41, %c0_42], %63 {strides = array<i32>} : memref<128x1xf32, #tpu.memory_space<vmem>>, vector<128x1xf32>,
    } else {
    }
    return
  }
  func.func @transform_0(%arg0: i32) -> (i32, i32) {
    %c0_i32 = arith.constant 0 : i32
    %c0_i32_0 = arith.constant 0 : i32
    return %arg0, %c0_i32 : i32, i32
  }
  func.func @transform_1(%arg0: i32) -> (i32, i32) {
    %c0_i32 = arith.constant 0 : i32
    %c0_i32_0 = arith.constant 0 : i32
    %c0_i32_1 = arith.constant 0 : i32
    return %c0_i32, %c0_i32_0 : i32, i32
  }
  func.func @transform_2(%arg0: i32) -> (i32, i32) {
    %c0_i32 = arith.constant 0 : i32
    %c0_i32_0 = arith.constant 0 : i32
    %c0_i32_1 = arith.constant 0 : i32
    return %c0_i32, %c0_i32_0 : i32, i32
  }
  func.func @transform_3(%arg0: i32) -> (i32, i32) {
    %c0_i32 = arith.constant 0 : i32
    %c0_i32_0 = arith.constant 0 : i32
    %c0_i32_1 = arith.constant 0 : i32
    return %c0_i32, %c0_i32_0 : i32, i32
  }
  func.func @transform_4(%arg0: i32) -> (i32, i32) {
    %c0_i32 = arith.constant 0 : i32
    %c0_i32_0 = arith.constant 0 : i32
    %c0_i32_1 = arith.constant 0 : i32
    return %c0_i32, %c0_i32_0 : i32, i32
  }
  func.func @transform_5(%arg0: i32) -> (i32, i32) {
    %c0_i32 = arith.constant 0 : i32
    %c0_i32_0 = arith.constant 0 : i32
    %c0_i32_1 = arith.constant 0 : i32
    return %c0_i32, %c0_i32_0 : i32, i32
  }
  func.func @transform_6(%arg0: i32) -> (i32, i32) {
    %c0_i32 = arith.constant 0 : i32
    %c0_i32_0 = arith.constant 0 : i32
    %c0_i32_1 = arith.constant 0 : i32
    return %c0_i32, %c0_i32_0 : i32, i32
  }
  func.func @transform_7(%arg0: i32) -> (i32, i32) {
    %c0_i32 = arith.constant 0 : i32
    %c0_i32_0 = arith.constant 0 : i32
    return %c0_i32, %arg0 : i32, i32
  }
  func.func @transform_8(%arg0: i32) -> (i32, i32) {
    %c0_i32 = arith.constant 0 : i32
    %c0_i32_0 = arith.constant 0 : i32
    %c0_i32_1 = arith.constant 0 : i32
    return %c0_i32, %c0_i32_0 : i32, i32
  }
  func.func @transform_9(%arg0: i32) -> (i32, i32) {
    %c0_i32 = arith.constant 0 : i32
    %c0_i32_0 = arith.constant 0 : i32
    %c0_i32_1 = arith.constant 0 : i32
    return %c0_i32, %c0_i32_0 : i32, i32
  }
}

</mosaic_0001>

<bundles_post_ra>
// kernel: tpu_custom_call.1
= control target key start
LH: loop header
LB: loop body
LE: loop exit
PB: predicated region body
PF: predicated region fallthrough
CT: control target
= control target key end

     0   :  { %15 = vsyncpa [#allocation5], 0  ;;  %s3402_s0 = inlined_call_operand.vmem [shape: f32[512,128], index: 0, kind: input, shape index: {}]   ;;  %s3403_s1 = inlined_call_operand.hbm [shape: bf16[128,128], index: 1, kind: input, shape index: {}]   ;;  %s3404_s2 = inlined_call_operand.vmem [shape: f32[128,1], index: 2, kind: input, shape index: {}]   ;;  %s3405_s3 = inlined_call_operand.hbm [shape: f32[128,128], index: 3, kind: input, shape index: {}]   ;;  %s3406_s4 = inlined_call_operand.vmem [shape: f32[128,1], index: 4, kind: input, shape index: {}]   ;;  %s3407_s5 = inlined_call_operand.vmem [shape: f32[128,1], index: 5, kind: input, shape index: {}]   ;;  %s3408_s6 = inlined_call_operand.vmem [shape: f32[128,1], index: 6, kind: input, shape index: {}]   ;;  %s3409_s7 = inlined_call_operand.hbm [shape: bf16[128,512], index: 7, kind: output, shape index: {0}]   ;;  %s3410_s8 = inlined_call_operand.hbm [shape: bf16[128,128], index: 8, kind: output, shape index: {1}]   ;;  %s3411_s9 = inlined_call_operand.vmem [shape: f32[128,1], index: 9, kind: output, shape index: {2}]  }
   0x1   :  { %16 = vsyncpa [#allocation8], 0 }
   0x2   :  { %17 = vsyncpa [#allocation6], 0 }
   0x3   :  { %19 = vsyncpa [#allocation6 + $0x1], 0 }
   0x4   :  { %20 = vsyncpa [#allocation11], 0  ;;  %s2743_s30 = smov 0   ;;  %s2745_s10 = smov 0  }
   0x5   :  { %s2747_s11 = smov 0   ;;  %s2749_s12 = smov 0  }
   0x6 LB: > { %s2764_s13 = sadd.s32 4294967295, %s2677_s12   ;;  %s1967_s14 = sadd.s32 4294967294, %s2677_s12   ;;  %s2677_s12 = sphi %s2749_s12, %s3433_s12   ;;  %s2673_s11 = sphi %s2747_s11, %s3432_s11   ;;  %s2669_s10 = sphi %s2745_s10, %s3431_s10   ;;  %s2665_s30 = sphi %s2743_s30, %s3430_s30  }
   0x7   : > { %s2768_s15 = sadd.s32 1, %s2677_s12   ;;  %s185_s16 = sadd.s32 1, %s2673_s11 }
   0x8   : > { %s182_s17 = ssub.s32 %s2677_s12, %s2768_s15  ;;  %p195_p0 = scmp.ne.s32.totalorder %s2673_s11, %s2669_s10 }
   0x9   : > { %p183_p1 = scmp.eq.s32.totalorder %s182_s17, 0  ;;  %p3412_p2 = scmp.eq.s32.totalorder %s2764_s13, 3 }
   0xa   : > { %p201_p3 = scmp.ne.s32.totalorder %s2669_s10, %s2665_s30  ;;  %p202_p4 = scmp.eq.s32.totalorder %s1967_s14, 3 }
   0xb   : > { %s2779_s18 = scalar_select %p183_p1, %s2673_s11, %s185_s16  }
   0xc   : > { %p2783_p5 = por %p3412_p2, %p195_p0  ;;  %p2787_p6 = por %p202_p4, %p201_p3 }
   0xd   : > { %3414 = sst [smem:[#allocation16_spill]] %s2779_s18  ;;  %p1968_p7 = scmp.ge.s32.totalorder %s2677_s12, 1 }
   0xe   : > { %s3416_s20 = scalar_select %p2787_p6, 1, 0 }
   0xf   : > { %p251_p8 = scmp.lt.s32.totalorder %s2677_s12, 5  ;;  %p3413_p10 = scmp.eq.s32.totalorder %s2764_s13, 0 }
  0x10   : > { %s2679_s22 = smov [#allocation4]   ;;  %s2680_s25 = smov [#allocation7]  }
  0x11   : > { %p2795_p11 = pnand %p1968_p7, %p251_p8  ;;  %s263_s23 = sshll.u32 %s2679_s22, 4  ;;  %s264_s23 = int_to_ptr.vmem [resolvable:$true] %s263_s23 }
  0x12   : > { %s279_s26 = sshll.u32 %s2680_s25, 4  ;;  %s2540_s27 = scalar_lea.vmem %s264_s23, 1024  ;;  %s280_s26 = int_to_ptr.vmem [resolvable:$true] %s279_s26 }
  0x13   : > { %p2422_p12 = pneg %p2795_p11  ;;  %p2541_p1 = scmp.ne.s32.totalorder %s264_s23, %s2540_s27 }
  0x14   : > { %p2548_p7 = scmp.lt.s32.totalorder %s264_s23, %s264_s23  ;;  %p2549_p8 = scmp.lt.s32.totalorder %s2540_s27, %s2540_s27 }
  0x15   : > { %p2803_p13 = pnand %p3413_p10, %p2422_p12 }
  0x16   : > { %p2550_p2 = por %p2549_p8, %p2548_p7 }
  0x17   : > { %p2531_p0 = pneg %p2803_p13 }
  0x19   : > { %p2543_p3 = pnand %p2541_p1, %p2531_p0 }
  0x1b   : > { %p2544_p4 = pneg %p2543_p3 }
  0x1d   : > { %p2551_p12 = pnand %p2550_p2, %p2544_p4 }
  0x1f   : > { %2554 = shalt.err (!%p2551_p12)
}
  0x20   : > { %s2681_s28 = smov 64   ;;  %s2682_s29 = smov 4  }
  0x21   : > { %2425 = dma.hbm_to_vmem [thread:$0]  (!%p2803_p13), %s3403_s1, 1024, %s264_s23, [#allocation5], %s2681_s28, %s2681_s28, %s2682_s29  }
  0x22   : > { %s2566_s17 = scalar_lea.vmem %s280_s26, 2048  ;;  %p2574_p10 = scmp.lt.s32.totalorder %s280_s26, %s280_s26 }
  0x23   : > { %p2567_p9 = scmp.ne.s32.totalorder %s280_s26, %s2566_s17  ;;  %p2575_p6 = scmp.lt.s32.totalorder %s2566_s17, %s2566_s17 }
  0x25   : > { %p2569_p1 = pnand %p2567_p9, %p2531_p0  ;;  %p2576_p7 = por %p2575_p6, %p2574_p10 }
  0x27   : > { %p2570_p3 = pneg %p2569_p1 }
  0x29   : > { %p2577_p2 = pnand %p2576_p7, %p2570_p3 }
  0x2b   : > { %2580 = shalt.err (!%p2577_p2)
}
  0x2c   : > { %s2683_s22 = smov 128   ;;  %s2684_s25 = smov 8  }
  0x2d   : > { %2428 = dma.hbm_to_vmem [thread:$0]  (!%p2803_p13), %s3405_s3, 2048, %s280_s26, [#allocation8], %s2683_s22, %s2683_s22, %s2684_s25  }
  0x2e   : > { %313 = sbr.rel (%p2795_p11) target bundleno = 1036 (0x40c), region = 48  ;;  %p3419_p4 = scmp.eq.s32.totalorder (!%p2795_p11), %s2764_s13, 0 }
  0x33   : > { %2648 = dma.done.wait (%p3419_p4), [#allocation5], 1024   ;;  %p3420_p9 = pmov %p3419_p4 }
  0x34   : > { %p3421_p6 = pmov %p3419_p4 }
  0x35   : > { %2650 = vsyncadd (%p3420_p9), [#allocation5], 4294966272 }
  0x36   : > { %2652 = dma.done.wait (%p3421_p6), [#allocation8], 2048   ;;  %p3422_p10 = pmov %p3419_p4 }
  0x37   : > { %s346_s18 = sand.u32 1, %s2669_s10   ;;  %s1976_s23 = sshll.u32 %s2764_s13, 4 }
  0x38   : > { %2654 = vsyncadd (%p3422_p10), [#allocation8], 4294965248  ;;  %s1975_s21 = sshll.u32 %s346_s18, 6  ;;  %p354_p11 = scmp.lt.s32.totalorder %s1976_s23, 63 }
  0x39   : > { %s2844_s14 = scalar_lea.vmem [#allocation9], %s1975_s21  ;;  %p3423_p13 = scmp.ne.s32.totalorder %s2764_s13, 0 }
  0x3a   : > { %s3435_s23 = smov (!%p354_p11, %s1976_s23), 63 }
  0x3b   : > { %s1977_s24 = sshll.u32 %s3435_s23, 3  ;;  %363 = sbr.rel (%p3423_p13) target bundleno = 81 (0x51), region = 60 }
  0x3c   : > { %s2842_s29 = scalar_lea.vmem %s3402_s0, %s1977_s24 }
  0x40   : > { %vm364_vm0 = vcmask 7168   ;;  %v2685_v0 = vmov 0.0  }
  0x41   : > { %365 = vst.msk [vmem:[#allocation2] sm:$0xff] %vm364_vm0, %v2685_v0  ;;  %366 = vst.msk [vmem:[#allocation2 + $0x8] sm:$0xff] %vm364_vm0, %v2685_v0 }
  0x42   : > { %367 = vst.msk [vmem:[#allocation2 + $0x10] sm:$0xff] %vm364_vm0, %v2685_v0  ;;  %368 = vst.msk [vmem:[#allocation2 + $0x18] sm:$0xff] %vm364_vm0, %v2685_v0 }
  0x43   : > { %369 = vst.msk [vmem:[#allocation2 + $0x20] sm:$0xff] %vm364_vm0, %v2685_v0  ;;  %370 = vst.msk [vmem:[#allocation2 + $0x28] sm:$0xff] %vm364_vm0, %v2685_v0 }
  0x44   : > { %371 = vst.msk [vmem:[#allocation2 + $0x30] sm:$0xff] %vm364_vm0, %v2685_v0  ;;  %372 = vst.msk [vmem:[#allocation2 + $0x38] sm:$0xff] %vm364_vm0, %v2685_v0 }
  0x45   : > { %373 = vst.msk [vmem:[#allocation2 + $0x40] sm:$0xff] %vm364_vm0, %v2685_v0  ;;  %374 = vst.msk [vmem:[#allocation2 + $0x48] sm:$0xff] %vm364_vm0, %v2685_v0 }
  0x46   : > { %375 = vst.msk [vmem:[#allocation2 + $0x50] sm:$0xff] %vm364_vm0, %v2685_v0  ;;  %376 = vst.msk [vmem:[#allocation2 + $0x58] sm:$0xff] %vm364_vm0, %v2685_v0 }
  0x47   : > { %377 = vst.msk [vmem:[#allocation2 + $0x60] sm:$0xff] %vm364_vm0, %v2685_v0  ;;  %378 = vst.msk [vmem:[#allocation2 + $0x68] sm:$0xff] %vm364_vm0, %v2685_v0 }
  0x48   : > { %379 = vst.msk [vmem:[#allocation2 + $0x70] sm:$0xff] %vm364_vm0, %v2685_v0  ;;  %380 = vst.msk [vmem:[#allocation2 + $0x78] sm:$0xff] %vm364_vm0, %v2685_v0 }
  0x49   : > { %381 = vst.msk [vmem:[#allocation3] sm:$0xff] %vm364_vm0, %v2685_v0  ;;  %382 = vst.msk [vmem:[#allocation3 + $0x8] sm:$0xff] %vm364_vm0, %v2685_v0 }
  0x4a   : > { %383 = vst.msk [vmem:[#allocation3 + $0x10] sm:$0xff] %vm364_vm0, %v2685_v0  ;;  %384 = vst.msk [vmem:[#allocation3 + $0x18] sm:$0xff] %vm364_vm0, %v2685_v0 }
  0x4b   : > { %385 = vst.msk [vmem:[#allocation3 + $0x20] sm:$0xff] %vm364_vm0, %v2685_v0  ;;  %386 = vst.msk [vmem:[#allocation3 + $0x28] sm:$0xff] %vm364_vm0, %v2685_v0 }
  0x4c   : > { %387 = vst.msk [vmem:[#allocation3 + $0x30] sm:$0xff] %vm364_vm0, %v2685_v0  ;;  %388 = vst.msk [vmem:[#allocation3 + $0x38] sm:$0xff] %vm364_vm0, %v2685_v0 }
  0x4d   : > { %389 = vst.msk [vmem:[#allocation3 + $0x40] sm:$0xff] %vm364_vm0, %v2685_v0  ;;  %390 = vst.msk [vmem:[#allocation3 + $0x48] sm:$0xff] %vm364_vm0, %v2685_v0 }
  0x4e   : > { %391 = vst.msk [vmem:[#allocation3 + $0x50] sm:$0xff] %vm364_vm0, %v2685_v0  ;;  %392 = vst.msk [vmem:[#allocation3 + $0x58] sm:$0xff] %vm364_vm0, %v2685_v0 }
  0x4f   : > { %393 = vst.msk [vmem:[#allocation3 + $0x60] sm:$0xff] %vm364_vm0, %v2685_v0  ;;  %394 = vst.msk [vmem:[#allocation3 + $0x68] sm:$0xff] %vm364_vm0, %v2685_v0 }
  0x50   : > { %395 = vst.msk [vmem:[#allocation3 + $0x70] sm:$0xff] %vm364_vm0, %v2685_v0  ;;  %396 = vst.msk [vmem:[#allocation3 + $0x78] sm:$0xff] %vm364_vm0, %v2685_v0 }
  0x51 PF: > { %v427_v1 = vld [vmem:[%s2842_s29 + $0x70] sm:$0xff]  ;;  %v428_v2 = vld [vmem:[%s2842_s29 + $0x78] sm:$0xff]  ;;  %v425_v3 = vld [vmem:[%s2842_s29 + $0x60] sm:$0xff]  ;;  %v2686_v6 = vmov 0   ;;  %p2003_p0 = scmp.ne.s32.totalorder %s2764_s13, 3 }
  0x52   : > { %v436_v4 = vpack.c.bf16 %v428_v2, %v427_v1  ;;  %v426_v5 = vld [vmem:[%s2842_s29 + $0x68] sm:$0xff]  ;;  %2485 = vset.pattern.permute.xlu0 %v2686_v6  ;;  %2486 = vset.pattern.permute.xlu1 %v2686_v6  ;;  %v423_v8 = vld [vmem:[%s2842_s29 + $0x50] sm:$0xff]  ;;  %v424_v9 = vld [vmem:[%s2842_s29 + $0x58] sm:$0xff] }
  0x53   : > { %v435_v7 = vpack.c.bf16 %v426_v5, %v425_v3  ;;  %v2487_v10 = vld [vmem:[#allocation4] sm:$0xff]   ;;  %v434_v12 = vpack.c.bf16 %v424_v9, %v423_v8  ;;  %v439_v14 = vld [vmem:[%s3404_s2 + $0x10] sm:$0xff]  ;;  %v422_v16 = vld [vmem:[%s2842_s29 + $0x48] sm:$0xff] }
  0x54   : > { %2248 = vmatprep.subr.bf16.mxu0 %v436_v4  ;;  %2392 = vmatprep.subr.bf16.mxu1 %v436_v4  ;;  %v2488_v11 = vld [vmem:[#allocation4 + $0x20] sm:$0xff]   ;;  %v438_v17 = vld [vmem:[%s3404_s2 + $0x8] sm:$0xff]  ;;  %v440_v18 = vld [vmem:[%s3404_s2 + $0x18] sm:$0xff] }
  0x55   : > { %2249 = vmatpush3.bf16.xpose.msra.mxu0 %v436_v4  ;;  %2400 = vmatpush3.bf16.xpose.msra.mxu1 %v436_v4  ;;  %v437_v13 = vld [vmem:[%s3404_s2] sm:$0xff]  ;;  %v442_v21 = vld [vmem:[%s3404_s2 + $0x28] sm:$0xff]  ;;  %v419_v22 = vld [vmem:[%s2842_s29 + $0x30] sm:$0xff] }
  0x56   : > { %2250 = vmatprep.subr.bf16.mxu0 %v435_v7  ;;  %2393 = vmatprep.subr.bf16.mxu1 %v435_v7  ;;  %v421_v15 = vld [vmem:[%s2842_s29 + $0x40] sm:$0xff]  ;;  %v420_v23 = vld [vmem:[%s2842_s29 + $0x38] sm:$0xff]  ;;  %v443_v24 = vld [vmem:[%s3404_s2 + $0x30] sm:$0xff] }
  0x57   : > { %2264 = vmatprep.mubr.bf16.mxu0 %v2487_v10  ;;  %2272 = vmatprep.mubr.bf16.mxu1 %v2488_v11  ;;  %v433_v19 = vpack.c.bf16 %v422_v16, %v421_v15  ;;  %v441_v20 = vld [vmem:[%s3404_s2 + $0x20] sm:$0xff]  ;;  %v444_v25 = vld [vmem:[%s3404_s2 + $0x38] sm:$0xff]  ;;  %v432_v26 = vpack.c.bf16 %v420_v23, %v419_v22  ;;  %v446_v28 = vld [vmem:[%s3404_s2 + $0x48] sm:$0xff] }
  0x58   : > { %455 = vperm.xlu0 %2485, %v437_v13   ;;  %465 = vperm.xlu1 %2486, %v439_v14   ;;  %v445_v27 = vld [vmem:[%s3404_s2 + $0x40] sm:$0xff]  ;;  %v418_v30 = vld [vmem:[%s2842_s29 + $0x28] sm:$0xff]  ;;  %v447_v31 = vld [vmem:[%s3404_s2 + $0x50] sm:$0xff] }
  0x59   : > { %v417_v29 = vld [vmem:[%s2842_s29 + $0x20] sm:$0xff]  ;;  %v448_v32 = vld [vmem:[%s3404_s2 + $0x58] sm:$0xff]  ;;  %v450_v35 = vld [vmem:[%s3404_s2 + $0x68] sm:$0xff] }
  0x5a   : > { %v431_v33 = vpack.c.bf16 %v418_v30, %v417_v29  ;;  %v449_v34 = vld [vmem:[%s3404_s2 + $0x60] sm:$0xff]  ;;  %v415_v36 = vld [vmem:[%s2842_s29 + $0x10] sm:$0xff]  ;;  %v416_v37 = vld [vmem:[%s2842_s29 + $0x18] sm:$0xff] }
  0x5b   : > { %v451_v38 = vld [vmem:[%s3404_s2 + $0x70] sm:$0xff]  ;;  %v452_v39 = vld [vmem:[%s3404_s2 + $0x78] sm:$0xff]  ;;  %v430_v40 = vpack.c.bf16 %v416_v37, %v415_v36  ;;  %v413_v41 = vld [vmem:[%s2842_s29] sm:$0xff] }
  0x5c   : > { %460 = vperm.xlu0 %2485, %v438_v17   ;;  %470 = vperm.xlu1 %2486, %v440_v18   ;;  %v414_v42 = vld [vmem:[%s2842_s29 + $0x8] sm:$0xff]  ;;  %v2491_v46 = vld [vmem:[#allocation4 + $0x10] sm:$0xff]   ;;  %v2493_v48 = vld [vmem:[#allocation4 + $0x18] sm:$0xff]  }
  0x5d   : > { %2251 = vmatpush3.bf16.xpose.msra.mxu0 %v435_v7  ;;  %2401 = vmatpush3.bf16.xpose.msra.mxu1 %v435_v7  ;;  %v429_v43 = vpack.c.bf16 %v414_v42, %v413_v41  ;;  %v2489_v44 = vld [vmem:[#allocation4 + $0x8] sm:$0xff]   ;;  %v2492_v47 = vld [vmem:[#allocation4 + $0x30] sm:$0xff]   ;;  %v2494_v49 = vld [vmem:[#allocation4 + $0x38] sm:$0xff]  }
  0x5e   : > { %2252 = vmatprep.subr.bf16.mxu0 %v434_v12  ;;  %2394 = vmatprep.subr.bf16.mxu1 %v434_v12  ;;  %v2490_v45 = vld [vmem:[#allocation4 + $0x28] sm:$0xff]  }
  0x60   : > { %475 = vperm.xlu0 %2485, %v441_v20   ;;  %480 = vperm.xlu1 %2486, %v442_v21  }
  0x64   : > { %485 = vperm.xlu0 %2485, %v443_v24   ;;  %490 = vperm.xlu1 %2486, %v444_v25  }
  0x65   : > { %2253 = vmatpush3.bf16.xpose.msra.mxu0 %v434_v12  ;;  %2402 = vmatpush3.bf16.xpose.msra.mxu1 %v434_v12 }
  0x66   : > { %2254 = vmatprep.subr.bf16.mxu0 %v433_v19  ;;  %2395 = vmatprep.subr.bf16.mxu1 %v433_v19 }
  0x68   : > { %495 = vperm.xlu0 %2485, %v445_v27   ;;  %500 = vperm.xlu1 %2486, %v446_v28  }
  0x6c   : > { %505 = vperm.xlu0 %2485, %v447_v31   ;;  %510 = vperm.xlu1 %2486, %v448_v32  }
  0x6d   : > { %2255 = vmatpush3.bf16.xpose.msra.mxu0 %v433_v19  ;;  %2403 = vmatpush3.bf16.xpose.msra.mxu1 %v433_v19 }
  0x6e   : > { %2256 = vmatprep.subr.bf16.mxu0 %v432_v26  ;;  %2396 = vmatprep.subr.bf16.mxu1 %v432_v26 }
  0x70   : > { %515 = vperm.xlu0 %2485, %v449_v34   ;;  %520 = vperm.xlu1 %2486, %v450_v35  }
  0x74   : > { %525 = vperm.xlu0 %2485, %v451_v38   ;;  %530 = vperm.xlu1 %2486, %v452_v39  }
  0x75   : > { %2257 = vmatpush3.bf16.xpose.msra.mxu0 %v432_v26  ;;  %2404 = vmatpush3.bf16.xpose.msra.mxu1 %v432_v26 }
  0x76   : > { %2258 = vmatprep.subr.bf16.mxu0 %v431_v33  ;;  %2397 = vmatprep.subr.bf16.mxu1 %v431_v33 }
  0x7d   : > { %2259 = vmatpush3.bf16.xpose.msra.mxu0 %v431_v33  ;;  %2405 = vmatpush3.bf16.xpose.msra.mxu1 %v431_v33 }
  0x7e   : > { %2260 = vmatprep.subr.bf16.mxu0 %v430_v40  ;;  %2398 = vmatprep.subr.bf16.mxu1 %v430_v40 }
  0x85   : > { %2261 = vmatpush3.bf16.xpose.msra.mxu0 %v430_v40  ;;  %2406 = vmatpush3.bf16.xpose.msra.mxu1 %v430_v40 }
  0x86   : > { %2262 = vmatprep.subr.bf16.mxu0 %v429_v43  ;;  %2399 = vmatprep.subr.bf16.mxu1 %v429_v43 }
  0x8d   : > { %2263 = vmatpush3.bf16.xpose.msra.mxu0 %v429_v43  ;;  %2407 = vmatpush3.bf16.xpose.msra.mxu1 %v429_v43 }
  0x94   : > { %2265 = vmatmul.mubr.bf16.vlgmr.msra.gmra.mxu0 %v2489_v44  ;;  %2273 = vmatmul.mubr.bf16.vlgmr.msra.gmra.mxu1 %v2490_v45 }
  0x95   : > { %2268 = vmatprep.mubr.bf16.mxu0 %v2491_v46  ;;  %2276 = vmatprep.mubr.bf16.mxu1 %v2492_v47 }
  0x9c   : > { %2269 = vmatmul.mubr.bf16.gmra.mxu0 %v2493_v48  ;;  %2277 = vmatmul.mubr.bf16.gmra.mxu1 %v2494_v49 }
  0xd3   : > { %v456_v50 = vpop.permute.xlu0 %455  ;;  %v466_v51 = vpop.permute.xlu1 %465 }
  0xd7   : > { %v461_v52 = vpop.permute.xlu0 %460  ;;  %v471_v53 = vpop.permute.xlu1 %470 }
  0xdb   : > { %v2944_v54 = vpop.permute.xlu0 %475  ;;  %v2946_v55 = vpop.permute.xlu1 %480 }
  0xdf   : > { %v486_v56 = vpop.permute.xlu0 %485  ;;  %v2948_v57 = vpop.permute.xlu1 %490 }
  0xe3   : > { %v496_v58 = vpop.permute.xlu0 %495  ;;  %v501_v59 = vpop.permute.xlu1 %500 }
  0xe7   : > { %v506_v60 = vpop.permute.xlu0 %505  ;;  %v511_v61 = vpop.permute.xlu1 %510 }
  0xeb   : > { %v516_v10 = vpop.permute.xlu0 %515  ;;  %v521_v11 = vpop.permute.xlu1 %520 }
  0xef   : > { %v526_v32 = vpop.permute.xlu0 %525  ;;  %v531_v33 = vpop.permute.xlu1 %530 }
 0x154   : > { %v2266_v62 = vpop.f32.mrf.mxu0  ;;  %v2274_v63 = vpop.f32.mrf.mxu1 }
 0x155   : > { %v624_v0 = vadd.f32 %v2266_v62, %v466_v51  ;;  %v656_v1 = vadd.f32 %v2274_v63, %v506_v60 }
 0x156   : > { %v615_v2 = vpop.f32.mrf.mxu0  ;;  %v647_v3 = vpop.f32.mrf.mxu1 }
 0x157   : > { %v696_v4 = vmul.f32 0.1, %v624_v0  ;;  %v704_v5 = vmul.f32 0.1, %v656_v1  ;;  %v616_v6 = vadd.f32 %v615_v2, %v456_v50  ;;  %v648_v7 = vadd.f32 %v647_v3, %v496_v58 }
 0x158   : > { %v2267_v8 = vpop.f32.mrf.mxu0  ;;  %v2275_v9 = vpop.f32.mrf.mxu1  ;;  %vm688_vm1 = vcmp.gt.f32.partialorder %v656_v1, 0.0  ;;  %vm680_vm2 = vcmp.gt.f32.partialorder %v624_v0, 0.0 }
 0x159   : > { %v702_v12 = vmul.f32 0.1, %v648_v7  ;;  %v627_v13 = vadd.f32 %v2267_v8, %v471_v53  ;;  %v659_v14 = vadd.f32 %v2275_v9, %v511_v61  ;;  %v694_v15 = vmul.f32 0.1, %v616_v6 }
 0x15a   : > { %v720_v16 = vsel %vm688_vm1, %v656_v1, %v704_v5  ;;  %v650_v17 = vpop.f32.mrf.mxu1  ;;  %v712_v18 = vsel %vm680_vm2, %v624_v0, %v696_v4  ;;  %v618_v19 = vpop.f32.mrf.mxu0  ;;  %vm686_vm3 = vcmp.gt.f32.partialorder %v648_v7, 0.0  ;;  %vm678_vm4 = vcmp.gt.f32.partialorder %v616_v6, 0.0 }
 0x15b   : > { %v697_v20 = vmul.f32 0.1, %v627_v13  ;;  %842 = vadd.xlane.f32.xlu1 %v720_v16  ;;  %v651_v21 = vadd.f32 %v650_v17, %v501_v59  ;;  %826 = vadd.xlane.f32.xlu0 %v712_v18  ;;  %v619_v22 = vadd.f32 %v618_v19, %v461_v52  ;;  %v705_v23 = vmul.f32 0.1, %v659_v14 }
 0x15c   : > { %v2270_v24 = vpop.f32.mrf.mxu0  ;;  %v2278_v25 = vpop.f32.mrf.mxu1  ;;  %vm681_vm5 = vcmp.gt.f32.partialorder %v627_v13, 0.0  ;;  %v2950_v27 = vsel %vm686_vm3, %v648_v7, %v702_v12  ;;  %v710_v30 = vsel %vm678_vm4, %v616_v6, %v694_v15  ;;  %vm689_vm6 = vcmp.gt.f32.partialorder %v659_v14, 0.0 }
 0x15d   : > { %v703_v26 = vmul.f32 0.1, %v651_v21  ;;  %v2952_v31 = vsel %vm681_vm5, %v627_v13, %v697_v20  ;;  %vm687_vm7 = vcmp.gt.f32.partialorder %v651_v21, 0.0  ;;  %v695_v34 = vmul.f32 0.1, %v619_v22 }
 0x15e   : > { %v663_v28 = vpop.f32.mrf.mxu1  ;;  %v631_v29 = vpop.f32.mrf.mxu0  ;;  %v640_v35 = vadd.f32 %v2270_v24, %v486_v56  ;;  %v905_v36 = vmul.f32 %v712_v18, %v712_v18  ;;  %v672_v37 = vadd.f32 %v2278_v25, %v526_v32  ;;  %v2082_v40 = vpack.c.bf16 %v2952_v31, %v712_v18  ;;  %v814_v32 = vld [vmem:[#allocation2 + $0x40] sm:$0xff] }
 0x15f   : > { %838 = vadd.xlane.f32.xlu1 %v2950_v27  ;;  %822 = vadd.xlane.f32.xlu0 %v710_v30  ;;  %v721_v41 = vsel %vm689_vm6, %v659_v14, %v705_v23  ;;  %v2956_v42 = vsel %vm687_vm7, %v651_v21, %v703_v26  ;;  %v664_v43 = vadd.f32 %v663_v28, %v516_v10  ;;  %vm679_vm8 = vcmp.gt.f32.partialorder %v619_v22, 0.0  ;;  %v816_v26 = vld [vmem:[#allocation2 + $0x50] sm:$0xff] }
 0x160   : > { %v2271_v38 = vpop.f32.mrf.mxu0  ;;  %v2279_v39 = vpop.f32.mrf.mxu1  ;;  %v632_v44 = vadd.f32 %v631_v29, %v2944_v54  ;;  %2154 = vst [vmem:[%s2844_s14 + $0x8] sm:$0xff] %v2082_v40   ;;  %v913_v49 = vmul.f32 %v720_v16, %v720_v16  ;;  %v2102_v50 = vpack.c.bf16 %v721_v41, %v720_v16  ;;  %v2097_v51 = vpack.c.bf16 %v2956_v42, %v2950_v27 }
 0x161   : > { %v643_v45 = vadd.f32 %v2271_v38, %v2948_v57  ;;  %v675_v46 = vadd.f32 %v2279_v39, %v531_v33  ;;  %v700_v52 = vmul.f32 0.1, %v640_v35  ;;  %v708_v54 = vmul.f32 0.1, %v672_v37  ;;  %v806_v33 = vld [vmem:[#allocation2] sm:$0xff]  ;;  %v889_v38 = vld [vmem:[#allocation3 + $0x10] sm:$0xff] }
 0x162   : > { %v666_v47 = vpop.f32.mrf.mxu1  ;;  %v634_v48 = vpop.f32.mrf.mxu0  ;;  %2158 = vst [vmem:[%s2844_s14 + $0x28] sm:$0xff] %v2102_v50   ;;  %2157 = vst [vmem:[%s2844_s14 + $0x20] sm:$0xff] %v2097_v51   ;;  %vm684_vm9 = vcmp.gt.f32.partialorder %v640_v35, 0.0  ;;  %v706_v59 = vmul.f32 0.1, %v664_v43  ;;  %v711_v62 = vsel %vm679_vm8, %v619_v22, %v695_v34  ;;  %vm692_vm10 = vcmp.gt.f32.partialorder %v672_v37, 0.0 }
 0x163   : > { %v701_v53 = vmul.f32 0.1, %v643_v45  ;;  %v667_v56 = vadd.f32 %v666_v47, %v521_v11  ;;  %923 = vadd.xlane.f32.xlu1 %v905_v36  ;;  %v635_v58 = vadd.f32 %v634_v48, %v2946_v55  ;;  %828 = vadd.xlane.f32.xlu0 %v2952_v31  ;;  %v709_v57 = vmul.f32 0.1, %v675_v46  ;;  %v809_v39 = vld [vmem:[#allocation2 + $0x18] sm:$0xff]  ;;  %v815_v50 = vld [vmem:[#allocation2 + $0x48] sm:$0xff] }
 0x164   : > { %v698_v60 = vmul.f32 0.1, %v632_v44  ;;  %v2077_v0 = vpack.c.bf16 %v711_v62, %v710_v30  ;;  %vm685_vm11 = vcmp.gt.f32.partialorder %v643_v45, 0.0  ;;  %v716_v55 = vsel %vm684_vm9, %v640_v35, %v700_v52  ;;  %v887_v51 = vld [vmem:[#allocation3] sm:$0xff] }
 0x165   : > { %v707_v61 = vmul.f32 0.1, %v667_v56  ;;  %v699_v63 = vmul.f32 0.1, %v635_v58  ;;  %v717_v1 = vsel %vm685_vm11, %v643_v45, %v701_v53  ;;  %vm682_vm12 = vcmp.gt.f32.partialorder %v632_v44, 0.0  ;;  %v817_v45 = vld [vmem:[#allocation2 + $0x58] sm:$0xff] }
 0x166   : > { %vm693_vm13 = vcmp.gt.f32.partialorder %v675_v46, 0.0  ;;  %2078 = vst [vmem:[%s2844_s14] sm:$0xff] %v2077_v0   ;;  %v724_v2 = vsel %vm692_vm10, %v672_v37, %v708_v54  ;;  %v2092_v3 = vpack.c.bf16 %v717_v1, %v716_v55  ;;  %vm690_vm14 = vcmp.gt.f32.partialorder %v664_v43, 0.0  ;;  %v890_v54 = vld [vmem:[#allocation3 + $0x18] sm:$0xff]  ;;  %v807_v0 = vld [vmem:[#allocation2 + $0x8] sm:$0xff] }
 0x167   : > { %939 = vadd.xlane.f32.xlu1 %v913_v49  ;;  %844 = vadd.xlane.f32.xlu0 %v721_v41  ;;  %v725_v4 = vsel %vm693_vm13, %v675_v46, %v709_v57  ;;  %v903_v5 = vmul.f32 %v710_v30, %v710_v30  ;;  %vm683_vm15 = vcmp.gt.f32.partialorder %v635_v58, 0.0  ;;  %v714_v7 = vsel %vm682_vm12, %v632_v44, %v698_v60  ;;  %v897_v44 = vld [vmem:[#allocation3 + $0x50] sm:$0xff]  ;;  %v895_v57 = vld [vmem:[#allocation3 + $0x40] sm:$0xff] }
 0x168   : > { %v2112_v6 = vpack.c.bf16 %v725_v4, %v724_v2  ;;  %2156 = vst [vmem:[%s2844_s14 + $0x18] sm:$0xff] %v2092_v3   ;;  %v715_v8 = vsel %vm683_vm15, %v635_v58, %v699_v63  ;;  %vm691_vm0 = vcmp.gt.f32.partialorder %v667_v56, 0.0  ;;  %v722_v9 = vsel %vm690_vm14, %v664_v43, %v706_v59  ;;  %v898_v63 = vld [vmem:[#allocation3 + $0x58] sm:$0xff] }
 0x169   : > { %v2087_v10 = vpack.c.bf16 %v715_v8, %v714_v7  ;;  %v723_v11 = vsel %vm691_vm0, %v667_v56, %v707_v61  ;;  %v906_v13 = vmul.f32 %v2952_v31, %v2952_v31  ;;  %v911_v14 = vmul.f32 %v2950_v27, %v2950_v27  ;;  %v808_v27 = vld [vmem:[#allocation2 + $0x10] sm:$0xff] }
 0x16a   : > { %2160 = vst [vmem:[%s2844_s14 + $0x38] sm:$0xff] %v2112_v6   ;;  %v2107_v12 = vpack.c.bf16 %v723_v11, %v722_v9  ;;  %v914_v15 = vmul.f32 %v721_v41, %v721_v41  ;;  %v904_v16 = vmul.f32 %v711_v62, %v711_v62  ;;  %v912_v17 = vmul.f32 %v2956_v42, %v2956_v42 }
 0x16b   : > { %840 = vadd.xlane.f32.xlu0 %v2956_v42  ;;  %919 = vadd.xlane.f32.xlu1 %v903_v5  ;;  %2155 = vst [vmem:[%s2844_s14 + $0x10] sm:$0xff] %v2087_v10   ;;  %v909_v18 = vmul.f32 %v716_v55, %v716_v55  ;;  %v907_v19 = vmul.f32 %v714_v7, %v714_v7  ;;  %vm870_vm1 = vcmask 7168   ;;  %v812_v5 = vld [vmem:[#allocation2 + $0x30] sm:$0xff]  ;;  %v896_v10 = vld [vmem:[#allocation3 + $0x48] sm:$0xff] }
 0x16c   : > { %2159 = vst [vmem:[%s2844_s14 + $0x30] sm:$0xff] %v2107_v12   ;;  %v910_v20 = vmul.f32 %v717_v1, %v717_v1  ;;  %v915_v21 = vmul.f32 %v722_v9, %v722_v9  ;;  %v908_v22 = vmul.f32 %v715_v8, %v715_v8  ;;  %v917_v23 = vmul.f32 %v724_v2, %v724_v2 }
 0x16d   : > { %v916_v24 = vmul.f32 %v723_v11, %v723_v11  ;;  %v918_v25 = vmul.f32 %v725_v4, %v725_v4 }
 0x16f   : > { %925 = vadd.xlane.f32.xlu0 %v906_v13  ;;  %935 = vadd.xlane.f32.xlu1 %v911_v14 }
 0x173   : > { %941 = vadd.xlane.f32.xlu0 %v914_v15  ;;  %824 = vadd.xlane.f32.xlu1 %v711_v62 }
 0x177   : > { %921 = vadd.xlane.f32.xlu0 %v904_v16  ;;  %834 = vadd.xlane.f32.xlu1 %v716_v55  ;;  %v813_v16 = vld [vmem:[#allocation2 + $0x38] sm:$0xff] }
 0x17b   : > { %937 = vadd.xlane.f32.xlu0 %v912_v17  ;;  %850 = vadd.xlane.f32.xlu1 %v724_v2  ;;  %v810_v17 = vld [vmem:[#allocation2 + $0x20] sm:$0xff] }
 0x17f   : > { %836 = vadd.xlane.f32.xlu0 %v717_v1  ;;  %830 = vadd.xlane.f32.xlu1 %v714_v7 }
 0x183   : > { %852 = vadd.xlane.f32.xlu0 %v725_v4  ;;  %846 = vadd.xlane.f32.xlu1 %v722_v9  ;;  %v888_v4 = vld [vmem:[#allocation3 + $0x8] sm:$0xff] }
 0x187   : > { %832 = vadd.xlane.f32.xlu0 %v715_v8  ;;  %931 = vadd.xlane.f32.xlu1 %v909_v18 }
 0x18b   : > { %848 = vadd.xlane.f32.xlu0 %v723_v11  ;;  %927 = vadd.xlane.f32.xlu1 %v907_v19  ;;  %v820_v11 = vld [vmem:[#allocation2 + $0x70] sm:$0xff] }
 0x18f   : > { %933 = vadd.xlane.f32.xlu0 %v910_v20  ;;  %943 = vadd.xlane.f32.xlu1 %v915_v21 }
 0x193   : > { %929 = vadd.xlane.f32.xlu0 %v908_v22  ;;  %947 = vadd.xlane.f32.xlu1 %v917_v23  ;;  %v821_v22 = vld [vmem:[#allocation2 + $0x78] sm:$0xff]  ;;  %v818_v23 = vld [vmem:[#allocation2 + $0x60] sm:$0xff] }
 0x197   : > { %945 = vadd.xlane.f32.xlu0 %v916_v24 }
 0x19b   : > { %949 = vadd.xlane.f32.xlu0 %v918_v25 }
 0x1e4   : > { %v843_v28 = vpop.xlane.xlu1 %842  ;;  %v827_v29 = vpop.xlane.xlu0 %826 }
 0x1e5   : > { %v864_v30 = vadd.f32 %v843_v28, %v816_v26  ;;  %v856_v31 = vadd.f32 %v827_v29, %v808_v27  ;;  %v811_v28 = vld [vmem:[#allocation2 + $0x28] sm:$0xff]  ;;  %v893_v29 = vld [vmem:[#allocation3 + $0x30] sm:$0xff] }
 0x1e7   : > { %881 = vst.msk [vmem:[#allocation2 + $0x50] sm:$0xff] %vm870_vm1, %v864_v30  ;;  %873 = vst.msk [vmem:[#allocation2 + $0x10] sm:$0xff] %vm870_vm1, %v856_v31 }
 0x1e8   : > { %v839_v34 = vpop.xlane.xlu1 %838  ;;  %v823_v35 = vpop.xlane.xlu0 %822 }
 0x1e9   : > { %v862_v36 = vadd.f32 %v839_v34, %v814_v32  ;;  %v854_v37 = vadd.f32 %v823_v35, %v806_v33  ;;  %v819_v34 = vld [vmem:[#allocation2 + $0x68] sm:$0xff]  ;;  %v891_v35 = vld [vmem:[#allocation3 + $0x20] sm:$0xff] }
 0x1eb   : > { %879 = vst.msk [vmem:[#allocation2 + $0x40] sm:$0xff] %vm870_vm1, %v862_v36  ;;  %871 = vst.msk [vmem:[#allocation2] sm:$0xff] %vm870_vm1, %v854_v37 }
 0x1ec   : > { %v924_v40 = vpop.xlane.xlu1 %923  ;;  %v829_v41 = vpop.xlane.xlu0 %828 }
 0x1ed   : > { %v953_v42 = vadd.f32 %v924_v40, %v889_v38  ;;  %v857_v43 = vadd.f32 %v829_v41, %v809_v39  ;;  %v894_v40 = vld [vmem:[#allocation3 + $0x38] sm:$0xff]  ;;  %v899_v41 = vld [vmem:[#allocation3 + $0x60] sm:$0xff] }
 0x1ef   : > { %969 = vst.msk [vmem:[#allocation3 + $0x10] sm:$0xff] %vm870_vm1, %v953_v42  ;;  %874 = vst.msk [vmem:[#allocation2 + $0x18] sm:$0xff] %vm870_vm1, %v857_v43 }
 0x1f0   : > { %v940_v46 = vpop.xlane.xlu1 %939  ;;  %v845_v47 = vpop.xlane.xlu0 %844 }
 0x1f1   : > { %v961_v48 = vadd.f32 %v940_v46, %v897_v44  ;;  %v865_v49 = vadd.f32 %v845_v47, %v817_v45  ;;  %v892_v46 = vld [vmem:[#allocation3 + $0x28] sm:$0xff]  ;;  %v901_v47 = vld [vmem:[#allocation3 + $0x70] sm:$0xff] }
 0x1f3   : > { %977 = vst.msk [vmem:[#allocation3 + $0x50] sm:$0xff] %vm870_vm1, %v961_v48  ;;  %882 = vst.msk [vmem:[#allocation2 + $0x58] sm:$0xff] %vm870_vm1, %v865_v49 }
 0x1f4   : > { %v841_v52 = vpop.xlane.xlu0 %840  ;;  %v920_v53 = vpop.xlane.xlu1 %919 }
 0x1f5   : > { %v863_v56 = vadd.f32 %v841_v52, %v815_v50  ;;  %v951_v58 = vadd.f32 %v920_v53, %v887_v51  ;;  %v900_v52 = vld [vmem:[#allocation3 + $0x68] sm:$0xff] }
 0x1f7   : > { %880 = vst.msk [vmem:[#allocation2 + $0x48] sm:$0xff] %vm870_vm1, %v863_v56  ;;  %967 = vst.msk [vmem:[#allocation3] sm:$0xff] %vm870_vm1, %v951_v58  ;;  %v902_v58 = vld [vmem:[#allocation3 + $0x78] sm:$0xff] }
 0x1f8   : > { %v926_v59 = vpop.xlane.xlu0 %925  ;;  %v936_v60 = vpop.xlane.xlu1 %935 }
 0x1f9   : > { %v954_v61 = vadd.f32 %v926_v59, %v890_v54  ;;  %v959_v62 = vadd.f32 %v936_v60, %v895_v57 }
 0x1fb   : > { %970 = vst.msk [vmem:[#allocation3 + $0x18] sm:$0xff] %vm870_vm1, %v954_v61  ;;  %975 = vst.msk [vmem:[#allocation3 + $0x40] sm:$0xff] %vm870_vm1, %v959_v62 }
 0x1fc   : > { %v942_v55 = vpop.xlane.xlu0 %941  ;;  %v825_v1 = vpop.xlane.xlu1 %824 }
 0x1fd   : > { %v962_v2 = vadd.f32 %v942_v55, %v898_v63  ;;  %v855_v3 = vadd.f32 %v825_v1, %v807_v0 }
 0x1ff   : > { %978 = vst.msk [vmem:[#allocation3 + $0x58] sm:$0xff] %vm870_vm1, %v962_v2  ;;  %872 = vst.msk [vmem:[#allocation2 + $0x8] sm:$0xff] %vm870_vm1, %v855_v3 }
 0x200   : > { %v922_v6 = vpop.xlane.xlu0 %921  ;;  %v835_v7 = vpop.xlane.xlu1 %834 }
 0x201   : > { %v952_v8 = vadd.f32 %v922_v6, %v888_v4  ;;  %v860_v9 = vadd.f32 %v835_v7, %v812_v5 }
 0x203   : > { %968 = vst.msk [vmem:[#allocation3 + $0x8] sm:$0xff] %vm870_vm1, %v952_v8  ;;  %877 = vst.msk [vmem:[#allocation2 + $0x30] sm:$0xff] %vm870_vm1, %v860_v9 }
 0x204   : > { %v938_v12 = vpop.xlane.xlu0 %937  ;;  %v851_v13 = vpop.xlane.xlu1 %850 }
 0x205   : > { %v960_v14 = vadd.f32 %v938_v12, %v896_v10  ;;  %v868_v15 = vadd.f32 %v851_v13, %v820_v11 }
 0x207   : > { %976 = vst.msk [vmem:[#allocation3 + $0x48] sm:$0xff] %vm870_vm1, %v960_v14  ;;  %885 = vst.msk [vmem:[#allocation2 + $0x70] sm:$0xff] %vm870_vm1, %v868_v15 }
 0x208   : > { %v837_v18 = vpop.xlane.xlu0 %836  ;;  %v831_v19 = vpop.xlane.xlu1 %830 }
 0x209   : > { %v861_v20 = vadd.f32 %v837_v18, %v813_v16  ;;  %v858_v21 = vadd.f32 %v831_v19, %v810_v17 }
 0x20b   : > { %878 = vst.msk [vmem:[#allocation2 + $0x38] sm:$0xff] %vm870_vm1, %v861_v20  ;;  %875 = vst.msk [vmem:[#allocation2 + $0x20] sm:$0xff] %vm870_vm1, %v858_v21 }
 0x20c   : > { %v853_v24 = vpop.xlane.xlu0 %852  ;;  %v847_v25 = vpop.xlane.xlu1 %846 }
 0x20d   : > { %v869_v26 = vadd.f32 %v853_v24, %v821_v22  ;;  %v866_v27 = vadd.f32 %v847_v25, %v818_v23 }
 0x20f   : > { %886 = vst.msk [vmem:[#allocation2 + $0x78] sm:$0xff] %vm870_vm1, %v869_v26  ;;  %883 = vst.msk [vmem:[#allocation2 + $0x60] sm:$0xff] %vm870_vm1, %v866_v27 }
 0x210   : > { %v833_v30 = vpop.xlane.xlu0 %832  ;;  %v932_v31 = vpop.xlane.xlu1 %931 }
 0x211   : > { %v859_v32 = vadd.f32 %v833_v30, %v811_v28  ;;  %v957_v33 = vadd.f32 %v932_v31, %v893_v29 }
 0x213   : > { %876 = vst.msk [vmem:[#allocation2 + $0x28] sm:$0xff] %vm870_vm1, %v859_v32  ;;  %973 = vst.msk [vmem:[#allocation3 + $0x30] sm:$0xff] %vm870_vm1, %v957_v33 }
 0x214   : > { %v849_v36 = vpop.xlane.xlu0 %848  ;;  %v928_v37 = vpop.xlane.xlu1 %927 }
 0x215   : > { %v867_v38 = vadd.f32 %v849_v36, %v819_v34  ;;  %v955_v39 = vadd.f32 %v928_v37, %v891_v35 }
 0x217   : > { %884 = vst.msk [vmem:[#allocation2 + $0x68] sm:$0xff] %vm870_vm1, %v867_v38  ;;  %971 = vst.msk [vmem:[#allocation3 + $0x20] sm:$0xff] %vm870_vm1, %v955_v39 }
 0x218   : > { %v934_v42 = vpop.xlane.xlu0 %933  ;;  %v944_v43 = vpop.xlane.xlu1 %943 }
 0x219   : > { %v958_v44 = vadd.f32 %v934_v42, %v894_v40  ;;  %v963_v45 = vadd.f32 %v944_v43, %v899_v41 }
 0x21b   : > { %974 = vst.msk [vmem:[#allocation3 + $0x38] sm:$0xff] %vm870_vm1, %v958_v44  ;;  %979 = vst.msk [vmem:[#allocation3 + $0x60] sm:$0xff] %vm870_vm1, %v963_v45 }
 0x21c   : > { %v930_v48 = vpop.xlane.xlu0 %929  ;;  %v948_v49 = vpop.xlane.xlu1 %947 }
 0x21d   : > { %v956_v50 = vadd.f32 %v930_v48, %v892_v46  ;;  %v965_v51 = vadd.f32 %v948_v49, %v901_v47 }
 0x21f   : > { %972 = vst.msk [vmem:[#allocation3 + $0x28] sm:$0xff] %vm870_vm1, %v956_v50  ;;  %981 = vst.msk [vmem:[#allocation3 + $0x70] sm:$0xff] %vm870_vm1, %v965_v51 }
 0x220   : > { %v946_v53 = vpop.xlane.xlu0 %945 }
 0x221   : > { %v964_v56 = vadd.f32 %v946_v53, %v900_v52 }
 0x223   : > { %980 = vst.msk [vmem:[#allocation3 + $0x68] sm:$0xff] %vm870_vm1, %v964_v56  ;;  %986 = sbr.rel (%p2003_p0) target bundleno = 994 (0x3e2), region = 64 }
 0x224   : > { %v950_v54 = vpop.xlane.xlu0 %949 }
 0x225   : > { %v966_v57 = vadd.f32 %v950_v54, %v902_v58 }
 0x227   : > { %982 = vst.msk [vmem:[#allocation3 + $0x78] sm:$0xff] %vm870_vm1, %v966_v57 }
 0x228   : > { %v1002_v59 = vld [vmem:[#allocation2 + $0x78] sm:$0xff]  ;;  %v2687_v61 = vmov 0   ;;  %v1001_v0 = vld [vmem:[#allocation2 + $0x70] sm:$0xff]  ;;  %v1000_v3 = vld [vmem:[#allocation2 + $0x68] sm:$0xff] }
 0x229   : > { %2496 = vset.pattern.permute.xlu1 %v2687_v61  ;;  %2495 = vset.pattern.permute.xlu0 %v2687_v61  ;;  %v3012_v62 = vmul.f32 0.001953125, %v1002_v59  ;;  %v1033_v55 = vld [vmem:[#allocation3 + $0x70] sm:$0xff]  ;;  %v3014_v1 = vmul.f32 0.001953125, %v1001_v0  ;;  %v3018_v6 = vmul.f32 0.001953125, %v1000_v3  ;;  %v999_v8 = vld [vmem:[#allocation2 + $0x60] sm:$0xff]  ;;  %v998_v15 = vld [vmem:[#allocation2 + $0x58] sm:$0xff] }
 0x22a   : > { %v1049_v2 = vmul.f32 0.001953125, %v1033_v55  ;;  %v1032_v4 = vld [vmem:[#allocation3 + $0x68] sm:$0xff]  ;;  %v3022_v10 = vmul.f32 0.001953125, %v999_v8  ;;  %v1031_v11 = vld [vmem:[#allocation3 + $0x60] sm:$0xff]  ;;  %v1030_v16 = vld [vmem:[#allocation3 + $0x58] sm:$0xff]  ;;  %v3028_v19 = vmul.f32 0.001953125, %v998_v15 }
 0x22b   : > { %v1066_v5 = vmul.f32 %v3012_v62, %v3012_v62  ;;  %v1048_v7 = vmul.f32 0.001953125, %v1032_v4  ;;  %v1065_v9 = vmul.f32 %v3014_v1, %v3014_v1  ;;  %v1064_v13 = vmul.f32 %v3018_v6, %v3018_v6  ;;  %v997_v21 = vld [vmem:[#allocation2 + $0x50] sm:$0xff]  ;;  %v996_v30 = vld [vmem:[#allocation2 + $0x48] sm:$0xff]  ;;  %v995_v35 = vld [vmem:[#allocation2 + $0x40] sm:$0xff] }
 0x22c   : > { %v1047_v14 = vmul.f32 0.001953125, %v1031_v11  ;;  %v1063_v18 = vmul.f32 %v3022_v10, %v3022_v10  ;;  %v1046_v20 = vmul.f32 0.001953125, %v1030_v16  ;;  %v1029_v22 = vld [vmem:[#allocation3 + $0x50] sm:$0xff]  ;;  %v3030_v25 = vmul.f32 0.001953125, %v997_v21  ;;  %v1028_v31 = vld [vmem:[#allocation3 + $0x48] sm:$0xff]  ;;  %v1027_v39 = vld [vmem:[#allocation3 + $0x40] sm:$0xff] }
 0x22d   : > { %v1081_v17 = vsub.f32 %v1049_v2, %v1065_v9  ;;  %v1080_v24 = vsub.f32 %v1048_v7, %v1064_v13  ;;  %v1045_v26 = vmul.f32 0.001953125, %v1029_v22  ;;  %v1062_v29 = vmul.f32 %v3028_v19, %v3028_v19  ;;  %v994_v43 = vld [vmem:[#allocation2 + $0x38] sm:$0xff]  ;;  %v993_v51 = vld [vmem:[#allocation2 + $0x30] sm:$0xff]  ;;  %v992_v57 = vld [vmem:[#allocation2 + $0x28] sm:$0xff] }
 0x22e   : > { %v1034_v60 = vld [vmem:[#allocation3 + $0x78] sm:$0xff]  ;;  %v1079_v28 = vsub.f32 %v1047_v14, %v1063_v18  ;;  %v1061_v33 = vmul.f32 %v3030_v25, %v3030_v25  ;;  %v3036_v34 = vmul.f32 0.001953125, %v996_v30  ;;  %v1044_v38 = vmul.f32 0.001953125, %v1028_v31  ;;  %v1025_v59 = vld [vmem:[#allocation3 + $0x30] sm:$0xff]  ;;  %v1024_v55 = vld [vmem:[#allocation3 + $0x28] sm:$0xff] }
 0x22f   : > { %v1050_v63 = vmul.f32 0.001953125, %v1034_v60  ;;  %v1113_v27 = vadd.f32 1e-05, %v1081_v17  ;;  %v1112_v32 = vadd.f32 1e-05, %v1080_v24  ;;  %v1078_v37 = vsub.f32 %v1046_v20, %v1062_v29  ;;  %v1026_v50 = vld [vmem:[#allocation3 + $0x38] sm:$0xff] }
 0x230   : > { %v1111_v36 = vadd.f32 1e-05, %v1079_v28  ;;  %v1077_v40 = vsub.f32 %v1045_v26, %v1061_v33  ;;  %v1060_v41 = vmul.f32 %v3036_v34, %v3036_v34  ;;  %v3040_v42 = vmul.f32 0.001953125, %v995_v35  ;;  %v1098_v60 = vld [vmem:[%s3407_s5 + $0x78] sm:$0xff]  ;;  %v1097_v61 = vld [vmem:[%s3407_s5 + $0x70] sm:$0xff]  ;;  %v1096_v3 = vld [vmem:[%s3407_s5 + $0x68] sm:$0xff] }
 0x231   : > { %v1082_v12 = vsub.f32 %v1050_v63, %v1066_v5  ;;  %v1110_v44 = vadd.f32 1e-05, %v1078_v37  ;;  %v1043_v45 = vmul.f32 0.001953125, %v1027_v39  ;;  %v3042_v46 = vmul.f32 0.001953125, %v994_v43  ;;  %v991_v8 = vld [vmem:[#allocation2 + $0x20] sm:$0xff]  ;;  %v1161_v17 = vld [vmem:[%s3408_s6 + $0x70] sm:$0xff] }
 0x232   : > { %v1109_v47 = vadd.f32 1e-05, %v1077_v40  ;;  %v1076_v48 = vsub.f32 %v1044_v38, %v1060_v41  ;;  %v1059_v49 = vmul.f32 %v3040_v42, %v3040_v42  ;;  %v1042_v52 = vmul.f32 0.001953125, %v1026_v50  ;;  %v990_v28 = vld [vmem:[#allocation2 + $0x18] sm:$0xff]  ;;  %v1160_v30 = vld [vmem:[%s3408_s6 + $0x68] sm:$0xff]  ;;  %v989_v43 = vld [vmem:[#allocation2 + $0x10] sm:$0xff] }
 0x233   : > { %v1114_v23 = vadd.f32 1e-05, %v1082_v12  ;;  %v1058_v53 = vmul.f32 %v3042_v46, %v3042_v46  ;;  %v3048_v54 = vmul.f32 0.001953125, %v993_v51  ;;  %v3056_v0 = vmul.f32 0.001953125, %v992_v57  ;;  %v1095_v12 = vld [vmem:[%s3407_s5 + $0x60] sm:$0xff]  ;;  %v1022_v38 = vld [vmem:[#allocation3 + $0x18] sm:$0xff] }
 0x234   : > { %v1108_v56 = vadd.f32 1e-05, %v1076_v48  ;;  %v1075_v58 = vsub.f32 %v1043_v45, %v1059_v49  ;;  %v1041_v5 = vmul.f32 0.001953125, %v1025_v59  ;;  %v1040_v15 = vmul.f32 0.001953125, %v1024_v55  ;;  %v1159_v45 = vld [vmem:[%s3408_s6 + $0x60] sm:$0xff]  ;;  %v988_v57 = vld [vmem:[#allocation2 + $0x8] sm:$0xff] }
 0x235   : > { %2497 = vrsqrt.f32 %v1114_v23  ;;  %v1074_v63 = vsub.f32 %v1042_v52, %v1058_v53  ;;  %v1057_v7 = vmul.f32 %v3048_v54, %v3048_v54  ;;  %v1056_v21 = vmul.f32 %v3056_v0, %v3056_v0  ;;  %v1023_v23 = vld [vmem:[#allocation3 + $0x20] sm:$0xff]  ;;  %v1021_v52 = vld [vmem:[#allocation3 + $0x10] sm:$0xff] }
 0x236   : > { %2499 = vrsqrt.f32 %v1113_v27  ;;  %v1107_v4 = vadd.f32 1e-05, %v1075_v58  ;;  %v3074_v22 = vmul.f32 0.001953125, %v991_v8  ;;  %v1039_v35 = vmul.f32 0.001953125, %v1023_v23 }
 0x237   : > { %2501 = vrsqrt.f32 %v1112_v32  ;;  %v1106_v20 = vadd.f32 1e-05, %v1074_v63  ;;  %v1073_v27 = vsub.f32 %v1041_v5, %v1057_v7  ;;  %v1094_v32 = vld [vmem:[%s3407_s5 + $0x58] sm:$0xff]  ;;  %v3086_v37 = vmul.f32 0.001953125, %v990_v28 }
 0x238   : > { %2503 = vrsqrt.f32 %v1111_v36  ;;  %v1055_v36 = vmul.f32 %v3074_v22, %v3074_v22  ;;  %v1038_v48 = vmul.f32 0.001953125, %v1022_v38  ;;  %v1037_v63 = vmul.f32 0.001953125, %v1021_v52  ;;  %v1090_v28 = vld [vmem:[%s3407_s5 + $0x38] sm:$0xff]  ;;  %v1153_v52 = vld [vmem:[%s3408_s6 + $0x30] sm:$0xff] }
 0x239   : > { %2505 = vrsqrt.f32 %v1110_v44  ;;  %v1105_v41 = vadd.f32 1e-05, %v1073_v27  ;;  %v1054_v51 = vmul.f32 %v3086_v37, %v3086_v37  ;;  %v1156_v27 = vld [vmem:[%s3408_s6 + $0x48] sm:$0xff] }
 0x23a   : > { %2507 = vrsqrt.f32 %v1109_v47  ;;  %v1093_v47 = vld [vmem:[%s3407_s5 + $0x50] sm:$0xff]  ;;  %v1071_v50 = vsub.f32 %v1039_v35, %v1055_v36 }
 0x23b   : > { %2509 = vrsqrt.f32 %v1108_v56 }
 0x23c   : > { %2511 = vrsqrt.f32 %v1107_v4  ;;  %v1103_v55 = vadd.f32 1e-05, %v1071_v50  ;;  %v1020_v4 = vld [vmem:[#allocation3 + $0x8] sm:$0xff] }
 0x23d   : > { %2513 = vrsqrt.f32 %v1106_v20 }
 0x23e   : > { %2515 = vrsqrt.f32 %v1105_v41 }
 0x242   : > { %v2498_v2 = vpop.eup %2497 }
 0x243   : > { %v2500_v9 = vpop.eup %2499  ;;  %v3063_v11 = vmul.f32 %v2498_v2, %v1098_v60  ;;  %v1158_v60 = vld [vmem:[%s3408_s6 + $0x58] sm:$0xff]  ;;  %v1070_v2 = vsub.f32 %v1038_v48, %v1054_v51 }
 0x244   : > { %v2502_v13 = vpop.eup %2501  ;;  %v1145_v14 = vmul.f32 %v2500_v9, %v1097_v61  ;;  %v1092_v61 = vld [vmem:[%s3407_s5 + $0x48] sm:$0xff] }
 0x245   : > { %v2504_v16 = vpop.eup %2503  ;;  %1323 = vperm.xlu0 %2495, %v3063_v11   ;;  %v1144_v18 = vmul.f32 %v2502_v13, %v1096_v3  ;;  %v1091_v13 = vld [vmem:[%s3407_s5 + $0x40] sm:$0xff] }
 0x246   : > { %1318 = vperm.xlu1 %2496, %v1145_v14   ;;  %v1177_v24 = vmul.f32 %v1145_v14, %v3014_v1  ;;  %v1143_v26 = vmul.f32 %v2504_v16, %v1095_v12  ;;  %v2506_v29 = vpop.eup %2505  ;;  %v1072_v1 = vsub.f32 %v1040_v15, %v1056_v21  ;;  %v1157_v12 = vld [vmem:[%s3408_s6 + $0x50] sm:$0xff]  ;;  %v987_v14 = vld [vmem:[#allocation2] sm:$0xff]  ;;  %v1036_v15 = vmul.f32 0.001953125, %v1020_v4 }
 0x247   : > { %v1176_v31 = vmul.f32 %v1144_v18, %v3018_v6  ;;  %v1142_v6 = vmul.f32 %v2506_v29, %v1094_v32  ;;  %v2508_v44 = vpop.eup %2507  ;;  %v1102_v16 = vadd.f32 1e-05, %v1070_v2  ;;  %v1178_v29 = vmul.f32 %v3063_v11, %v3012_v62  ;;  %v1155_v62 = vld [vmem:[%s3408_s6 + $0x40] sm:$0xff]  ;;  %v1089_v11 = vld [vmem:[%s3407_s5 + $0x30] sm:$0xff] }
 0x248   : > { %v1193_v33 = vsub.f32 %v1161_v17, %v1177_v24  ;;  %v1175_v40 = vmul.f32 %v1143_v26, %v3022_v10  ;;  %v1104_v49 = vadd.f32 1e-05, %v1072_v1  ;;  %v3097_v10 = vmul.f32 0.001953125, %v989_v43  ;;  %v2510_v59 = vpop.eup %2509 }
 0x249   : > { %1313 = vperm.xlu0 %2495, %v1144_v18   ;;  %v1192_v39 = vsub.f32 %v1160_v30, %v1176_v31  ;;  %v1174_v56 = vmul.f32 %v1142_v6, %v3028_v19  ;;  %v1141_v58 = vmul.f32 %v2508_v44, %v1093_v47  ;;  %v3108_v19 = vmul.f32 0.001953125, %v988_v57  ;;  %v2512_v9 = vpop.eup %2511  ;;  %v1088_v47 = vld [vmem:[%s3407_s5 + $0x28] sm:$0xff] }
 0x24a   : > { %1639 = vperm.xlu1 %2496, %v1193_v33   ;;  %v1191_v53 = vsub.f32 %v1159_v45, %v1175_v40  ;;  %v1053_v3 = vmul.f32 %v3097_v10, %v3097_v10  ;;  %v1140_v8 = vmul.f32 %v2510_v59, %v1092_v61  ;;  %2517 = vrsqrt.f32 %v1104_v49  ;;  %v2514_v18 = vpop.eup %2513  ;;  %v1162_v33 = vld [vmem:[%s3408_s6 + $0x78] sm:$0xff] }
 0x24b   : > { %v1190_v5 = vsub.f32 %v1158_v60, %v1174_v56  ;;  %v1173_v7 = vmul.f32 %v1141_v58, %v3030_v25  ;;  %2519 = vrsqrt.f32 %v1103_v55  ;;  %v1052_v25 = vmul.f32 %v3108_v19, %v3108_v19  ;;  %v2516_v38 = vpop.eup %2515  ;;  %v1154_v45 = vld [vmem:[%s3408_s6 + $0x38] sm:$0xff] }
 0x24c   : > { %v1069_v17 = vsub.f32 %v1037_v63, %v1053_v3  ;;  %v1172_v21 = vmul.f32 %v1140_v8, %v3036_v34  ;;  %v1139_v23 = vmul.f32 %v2512_v9, %v1091_v13  ;;  %v3120_v24 = vmul.f32 0.001953125, %v987_v14  ;;  %v1086_v60 = vld [vmem:[%s3407_s5 + $0x18] sm:$0xff]  ;;  %v1085_v3 = vld [vmem:[%s3407_s5 + $0x10] sm:$0xff]  ;;  %v1084_v9 = vld [vmem:[%s3407_s5 + $0x8] sm:$0xff] }
 0x24d   : > { %1308 = vperm.xlu0 %2495, %v1143_v26   ;;  %v1189_v20 = vsub.f32 %v1157_v12, %v1173_v7  ;;  %v1019_v26 = vld [vmem:[#allocation3] sm:$0xff]  ;;  %2521 = vrsqrt.f32 %v1102_v16  ;;  %v1068_v31 = vsub.f32 %v1036_v15, %v1052_v25  ;;  %v1138_v1 = vmul.f32 %v2514_v18, %v1090_v28 }
 0x24e   : > { %1634 = vperm.xlu1 %2496, %v1192_v39   ;;  %v1101_v30 = vadd.f32 1e-05, %v1069_v17  ;;  %v1035_v34 = vmul.f32 0.001953125, %v1019_v26  ;;  %v1188_v32 = vsub.f32 %v1156_v27, %v1172_v21  ;;  %v1171_v35 = vmul.f32 %v1139_v23, %v3040_v42  ;;  %v1083_v16 = vld [vmem:[%s3407_s5] sm:$0xff] }
 0x24f   : > { %v1051_v36 = vmul.f32 %v3120_v24, %v3120_v24  ;;  %v1194_v39 = vsub.f32 %v1162_v33, %v1178_v29  ;;  %v1100_v40 = vadd.f32 1e-05, %v1068_v31  ;;  %v1170_v42 = vmul.f32 %v1138_v1, %v3042_v46  ;;  %v1195_v27 = vld [vmem:[#allocation7] sm:$0xff] }
 0x250   : > { %2523 = vrsqrt.f32 %v1101_v30  ;;  %v1137_v41 = vmul.f32 %v2516_v38, %v1089_v11  ;;  %2312 = vmatprep.mubr.f32.mxu0 %v1195_v27  ;;  %2368 = vmatprep.mubr.f32.mxu1 %v1195_v27  ;;  %v1209_v27 = vld [vmem:[#allocation7 + $0x70] sm:$0xff] }
 0x251   : > { %1303 = vperm.xlu0 %2495, %v1142_v6   ;;  %v1187_v6 = vsub.f32 %v1155_v62, %v1171_v35  ;;  %v1067_v43 = vsub.f32 %v1035_v34, %v1051_v36  ;;  %2525 = vrsqrt.f32 %v1100_v40  ;;  %v1186_v49 = vsub.f32 %v1154_v45, %v1170_v42 }
 0x252   : > { %1629 = vperm.xlu1 %2496, %v1191_v53   ;;  %v1169_v50 = vmul.f32 %v1137_v41, %v3048_v54  ;;  %v1087_v53 = vld [vmem:[%s3407_s5 + $0x20] sm:$0xff]  ;;  %v1152_v54 = vld [vmem:[%s3408_s6 + $0x28] sm:$0xff] }
 0x253   : > { %v1099_v46 = vadd.f32 1e-05, %v1067_v43 }
 0x255   : > { %1298 = vperm.xlu0 %2495, %v1141_v58   ;;  %v1185_v58 = vsub.f32 %v1153_v52, %v1169_v50  ;;  %2527 = vrsqrt.f32 %v1099_v46 }
 0x256   : > { %1624 = vperm.xlu1 %2496, %v1190_v5  }
 0x257   : > { %v2518_v44 = vpop.eup %2517 }
 0x258   : > { %v2520_v48 = vpop.eup %2519  ;;  %v1136_v51 = vmul.f32 %v2518_v44, %v1088_v47 }
 0x259   : > { %1293 = vperm.xlu0 %2495, %v1140_v8   ;;  %v1135_v59 = vmul.f32 %v2520_v48, %v1087_v53 }
 0x25a   : > { %1619 = vperm.xlu1 %2496, %v1189_v20   ;;  %v2522_v56 = vpop.eup %2521  ;;  %v1168_v57 = vmul.f32 %v1136_v51, %v3056_v0  ;;  %v1151_v0 = vld [vmem:[%s3408_s6 + $0x20] sm:$0xff] }
 0x25b   : > { %v1167_v55 = vmul.f32 %v1135_v59, %v3074_v22  ;;  %v1134_v2 = vmul.f32 %v2522_v56, %v1086_v60  ;;  %v1150_v22 = vld [vmem:[%s3408_s6 + $0x18] sm:$0xff] }
 0x25c   : > { %v1184_v63 = vsub.f32 %v1152_v54, %v1168_v57 }
 0x25d   : > { %1288 = vperm.xlu0 %2495, %v1139_v23   ;;  %v2524_v61 = vpop.eup %2523  ;;  %v1183_v5 = vsub.f32 %v1151_v0, %v1167_v55  ;;  %v1166_v7 = vmul.f32 %v1134_v2, %v3086_v37  ;;  %v1149_v37 = vld [vmem:[%s3408_s6 + $0x10] sm:$0xff]  ;;  %v1147_v23 = vld [vmem:[%s3408_s6] sm:$0xff] }
 0x25e   : > { %1614 = vperm.xlu1 %2496, %v1188_v32   ;;  %v2526_v4 = vpop.eup %2525  ;;  %v1133_v8 = vmul.f32 %v2524_v61, %v1085_v3 }
 0x25f   : > { %v1182_v12 = vsub.f32 %v1150_v22, %v1166_v7  ;;  %v1132_v14 = vmul.f32 %v2526_v4, %v1084_v9 }
 0x260   : > { %v1165_v13 = vmul.f32 %v1133_v8, %v3097_v10  ;;  %v1148_v10 = vld [vmem:[%s3408_s6 + $0x8] sm:$0xff] }
 0x261   : > { %1644 = vperm.xlu0 %2495, %v1194_v39   ;;  %v1164_v25 = vmul.f32 %v1132_v14, %v3108_v19  ;;  %v1211_v19 = vlaneseq }
 0x262   : > { %1609 = vperm.xlu1 %2496, %v1187_v6   ;;  %v2528_v15 = vpop.eup %2527  ;;  %v1181_v17 = vsub.f32 %v1149_v37, %v1165_v13  ;;  %v1199_v37 = vld [vmem:[#allocation7 + $0x20] sm:$0xff] }
 0x263   : > { %v1131_v18 = vmul.f32 %v2528_v15, %v1083_v16  ;;  %v1180_v20 = vsub.f32 %v1148_v10, %v1164_v25  ;;  %v3192_v28 = vshrl.u32 %v1211_v19, 7  ;;  %v3195_v30 = vand.u32 127, %v1211_v19  ;;  %v1198_v15 = vld [vmem:[#allocation7 + $0x18] sm:$0xff]  ;;  %v1200_v16 = vld [vmem:[#allocation7 + $0x28] sm:$0xff] }
 0x264   : > { %v1202_v25 = vld [vmem:[#allocation7 + $0x38] sm:$0xff]  ;;  %v1204_v10 = vld [vmem:[#allocation7 + $0x48] sm:$0xff] }
 0x265   : > { %1283 = vperm.xlu0 %2495, %v1138_v1   ;;  %v1163_v21 = vmul.f32 %v1131_v18, %v3120_v24  ;;  %v1227_v29 = vadd.s32 120, %v3192_v28  ;;  %v1226_v24 = vadd.s32 112, %v3192_v28  ;;  %v1225_v31 = vadd.s32 104, %v3192_v28  ;;  %v1210_v19 = vld [vmem:[#allocation7 + $0x78] sm:$0xff] }
 0x266   : > { %1604 = vperm.xlu1 %2496, %v1186_v49   ;;  %v1224_v33 = vadd.s32 96, %v3192_v28  ;;  %v1223_v36 = vadd.s32 88, %v3192_v28  ;;  %v1222_v11 = vadd.s32 80, %v3192_v28  ;;  %v1221_v6 = vadd.s32 72, %v3192_v28 }
 0x267   : > { %v1179_v26 = vsub.f32 %v1147_v23, %v1163_v21  ;;  %vm1245_vm2 = vcmp.eq.s32.totalorder %v1227_v29, %v3195_v30  ;;  %vm1244_vm3 = vcmp.eq.s32.totalorder %v1226_v24, %v3195_v30  ;;  %vm1243_vm4 = vcmp.eq.s32.totalorder %v1225_v31, %v3195_v30  ;;  %v1206_v21 = vld [vmem:[#allocation7 + $0x58] sm:$0xff]  ;;  %v1207_v23 = vld [vmem:[#allocation7 + $0x60] sm:$0xff] }
 0x268   : > { %vm1242_vm5 = vcmp.eq.s32.totalorder %v1224_v33, %v3195_v30  ;;  %vm1241_vm6 = vcmp.eq.s32.totalorder %v1223_v36, %v3195_v30  ;;  %vm1240_vm7 = vcmp.eq.s32.totalorder %v1222_v11, %v3195_v30  ;;  %vm1239_vm8 = vcmp.eq.s32.totalorder %v1221_v6, %v3195_v30  ;;  %v1792_v24 = vld [vmem:[%s3406_s4] sm:$0xff] }
 0x269   : > { %1278 = vperm.xlu0 %2495, %v1137_v41   ;;  %v1220_v43 = vadd.s32 64, %v3192_v28  ;;  %v1219_v49 = vadd.s32 56, %v3192_v28  ;;  %v1218_v46 = vadd.s32 48, %v3192_v28  ;;  %v1217_v56 = vadd.s32 40, %v3192_v28 }
 0x26a   : > { %1599 = vperm.xlu1 %2496, %v1185_v58   ;;  %v1215_v61 = vadd.s32 24, %v3192_v28  ;;  %v1213_v4 = vadd.s32 8, %v3192_v28 }
 0x26b   : > { %vm1238_vm9 = vcmp.eq.s32.totalorder %v1220_v43, %v3195_v30  ;;  %vm1237_vm10 = vcmp.eq.s32.totalorder %v1219_v49, %v3195_v30  ;;  %vm1236_vm11 = vcmp.eq.s32.totalorder %v1218_v46, %v3195_v30  ;;  %vm1235_vm12 = vcmp.eq.s32.totalorder %v1217_v56, %v3195_v30  ;;  %v1798_v56 = vld [vmem:[%s3406_s4 + $0x30] sm:$0xff] }
 0x26c   : > { %vm1233_vm14 = vcmp.eq.s32.totalorder %v1215_v61, %v3195_v30  ;;  %vm1231_vm0 = vcmp.eq.s32.totalorder %v1213_v4, %v3195_v30 }
 0x26d   : > { %1273 = vperm.xlu0 %2495, %v1136_v51  }
 0x26e   : > { %1594 = vperm.xlu1 %2496, %v1184_v63  }
 0x271   : > { %1268 = vperm.xlu0 %2495, %v1135_v59   ;;  %v1216_v59 = vadd.s32 32, %v3192_v28 }
 0x272   : > { %1589 = vperm.xlu1 %2496, %v1183_v5  }
 0x273   : > { %vm1234_vm13 = vcmp.eq.s32.totalorder %v1216_v59, %v3195_v30 }
 0x275   : > { %1263 = vperm.xlu0 %2495, %v1134_v2   ;;  %v1214_v2 = vadd.s32 16, %v3192_v28 }
 0x276   : > { %1584 = vperm.xlu1 %2496, %v1182_v12   ;;  %v1196_v12 = vld [vmem:[#allocation7 + $0x8] sm:$0xff] }
 0x277   : > { %vm1232_vm15 = vcmp.eq.s32.totalorder %v1214_v2, %v3195_v30  ;;  %v1800_v2 = vld [vmem:[%s3406_s4 + $0x40] sm:$0xff] }
 0x279   : > { %1258 = vperm.xlu0 %2495, %v1133_v8  }
 0x27a   : > { %1579 = vperm.xlu1 %2496, %v1181_v17   ;;  %v1201_v17 = vld [vmem:[#allocation7 + $0x30] sm:$0xff] }
 0x27d   : > { %1253 = vperm.xlu0 %2495, %v1132_v14   ;;  %v1197_v14 = vld [vmem:[#allocation7 + $0x10] sm:$0xff] }
 0x27e   : > { %1574 = vperm.xlu1 %2496, %v1180_v20   ;;  %v1205_v20 = vld [vmem:[#allocation7 + $0x50] sm:$0xff] }
 0x281   : > { %1248 = vperm.xlu0 %2495, %v1131_v18   ;;  %v1203_v18 = vld [vmem:[#allocation7 + $0x40] sm:$0xff] }
 0x282   : > { %1569 = vperm.xlu1 %2496, %v1179_v26   ;;  %v1208_v26 = vld [vmem:[#allocation7 + $0x68] sm:$0xff] }
 0x2c0   : > { %v1324_v34 = vpop.permute.xlu0 %1323 }
 0x2c1   : > { %v1319_v32 = vpop.permute.xlu1 %1318  ;;  %2280 = vmatprep.subr.msk.mxu0 %vm1245_vm2, %v1324_v34 }
 0x2c2   : > { %2281 = vmatpush3.msk.msra.mxu0 %vm1245_vm2, %v1324_v34  ;;  %vm1230_vm2 = vcmp.eq.s32.totalorder %v3192_v28, %v3195_v30  ;;  %v1793_v28 = vld [vmem:[%s3406_s4 + $0x8] sm:$0xff] }
 0x2c3   : > { %2282 = vmatprep.subr.msk.mxu0 %vm1244_vm3, %v1319_v32 }
 0x2c4   : > { %2283 = vmatpush3.msk.msra.mxu0 %vm1244_vm3, %v1319_v32  ;;  %v1314_v35 = vpop.permute.xlu0 %1313 }
 0x2c5   : > { %v1640_v1 = vpop.permute.xlu1 %1639  ;;  %2284 = vmatprep.subr.msk.mxu0 %vm1243_vm4, %v1314_v35 }
 0x2c6   : > { %2285 = vmatpush3.msk.msra.mxu0 %vm1243_vm4, %v1314_v35  ;;  %v1795_v35 = vld [vmem:[%s3406_s4 + $0x18] sm:$0xff] }
 0x2c8   : > { %v1309_v38 = vpop.permute.xlu0 %1308 }
 0x2c9   : > { %v1635_v62 = vpop.permute.xlu1 %1634  ;;  %2286 = vmatprep.subr.msk.mxu0 %vm1242_vm5, %v1309_v38 }
 0x2ca   : > { %2287 = vmatpush3.msk.msra.mxu0 %vm1242_vm5, %v1309_v38 }
 0x2cc   : > { %v1304_v39 = vpop.permute.xlu0 %1303 }
 0x2cd   : > { %v1630_v40 = vpop.permute.xlu1 %1629  ;;  %2288 = vmatprep.subr.msk.mxu0 %vm1241_vm6, %v1304_v39 }
 0x2ce   : > { %2289 = vmatpush3.msk.msra.mxu0 %vm1241_vm6, %v1304_v39 }
 0x2d0   : > { %v1299_v42 = vpop.permute.xlu0 %1298 }
 0x2d1   : > { %v1625_v41 = vpop.permute.xlu1 %1624  ;;  %2290 = vmatprep.subr.msk.mxu0 %vm1240_vm7, %v1299_v42 }
 0x2d2   : > { %2291 = vmatpush3.msk.msra.mxu0 %vm1240_vm7, %v1299_v42  ;;  %v1797_v42 = vld [vmem:[%s3406_s4 + $0x28] sm:$0xff] }
 0x2d4   : > { %v1294_v44 = vpop.permute.xlu0 %1293 }
 0x2d5   : > { %v1620_v45 = vpop.permute.xlu1 %1619  ;;  %2292 = vmatprep.subr.msk.mxu0 %vm1239_vm8, %v1294_v44 }
 0x2d6   : > { %2293 = vmatpush3.msk.msra.mxu0 %vm1239_vm8, %v1294_v44 }
 0x2d8   : > { %v1289_v47 = vpop.permute.xlu0 %1288 }
 0x2d9   : > { %v1615_v48 = vpop.permute.xlu1 %1614  ;;  %2294 = vmatprep.subr.msk.mxu0 %vm1238_vm9, %v1289_v47 }
 0x2da   : > { %2295 = vmatpush3.msk.msra.mxu0 %vm1238_vm9, %v1289_v47 }
 0x2dc   : > { %v1645_v50 = vpop.permute.xlu0 %1644 }
 0x2dd   : > { %v1610_v51 = vpop.permute.xlu1 %1609  ;;  %2336 = vmatprep.subr.mxu1 %v1645_v50 }
 0x2de   : > { %2337 = vmatpush3.msra.mxu1 %v1645_v50 }
 0x2df   : > { %2338 = vmatprep.subr.mxu1 %v1640_v1 }
 0x2e0   : > { %2339 = vmatpush3.msra.mxu1 %v1640_v1  ;;  %v1284_v52 = vpop.permute.xlu0 %1283 }
 0x2e1   : > { %v1605_v53 = vpop.permute.xlu1 %1604  ;;  %2296 = vmatprep.subr.msk.mxu0 %vm1237_vm10, %v1284_v52  ;;  %2340 = vmatprep.subr.mxu1 %v1635_v62 }
 0x2e2   : > { %2297 = vmatpush3.msk.msra.mxu0 %vm1237_vm10, %v1284_v52  ;;  %2341 = vmatpush3.msra.mxu1 %v1635_v62  ;;  %v1794_v62 = vld [vmem:[%s3406_s4 + $0x10] sm:$0xff] }
 0x2e3   : > { %2342 = vmatprep.subr.mxu1 %v1630_v40 }
 0x2e4   : > { %2343 = vmatpush3.msra.mxu1 %v1630_v40  ;;  %v1279_v58 = vpop.permute.xlu0 %1278 }
 0x2e5   : > { %v1600_v57 = vpop.permute.xlu1 %1599  ;;  %2298 = vmatprep.subr.msk.mxu0 %vm1236_vm11, %v1279_v58  ;;  %2344 = vmatprep.subr.mxu1 %v1625_v41 }
 0x2e6   : > { %2299 = vmatpush3.msk.msra.mxu0 %vm1236_vm11, %v1279_v58  ;;  %2345 = vmatpush3.msra.mxu1 %v1625_v41 }
 0x2e7   : > { %2346 = vmatprep.subr.mxu1 %v1620_v45 }
 0x2e8   : > { %2347 = vmatpush3.msra.mxu1 %v1620_v45  ;;  %v1274_v54 = vpop.permute.xlu0 %1273  ;;  %v1796_v45 = vld [vmem:[%s3406_s4 + $0x20] sm:$0xff] }
 0x2e9   : > { %v1595_v60 = vpop.permute.xlu1 %1594  ;;  %2300 = vmatprep.subr.msk.mxu0 %vm1235_vm12, %v1274_v54  ;;  %2348 = vmatprep.subr.mxu1 %v1615_v48 }
 0x2ea   : > { %2301 = vmatpush3.msk.msra.mxu0 %vm1235_vm12, %v1274_v54  ;;  %2349 = vmatpush3.msra.mxu1 %v1615_v48 }
 0x2eb   : > { %2350 = vmatprep.subr.mxu1 %v1610_v51 }
 0x2ec   : > { %2351 = vmatpush3.msra.mxu1 %v1610_v51  ;;  %v1269_v63 = vpop.permute.xlu0 %1268  ;;  %v1799_v51 = vld [vmem:[%s3406_s4 + $0x38] sm:$0xff] }
 0x2ed   : > { %v1590_v55 = vpop.permute.xlu1 %1589  ;;  %2302 = vmatprep.subr.msk.mxu0 %vm1234_vm13, %v1269_v63  ;;  %2352 = vmatprep.subr.mxu1 %v1605_v53 }
 0x2ee   : > { %2303 = vmatpush3.msk.msra.mxu0 %vm1234_vm13, %v1269_v63  ;;  %2353 = vmatpush3.msra.mxu1 %v1605_v53 }
 0x2ef   : > { %2354 = vmatprep.subr.mxu1 %v1600_v57 }
 0x2f0   : > { %2355 = vmatpush3.msra.mxu1 %v1600_v57  ;;  %v1264_v0 = vpop.permute.xlu0 %1263 }
 0x2f1   : > { %v1585_v3 = vpop.permute.xlu1 %1584  ;;  %2304 = vmatprep.subr.msk.mxu0 %vm1233_vm14, %v1264_v0  ;;  %2356 = vmatprep.subr.mxu1 %v1595_v60 }
 0x2f2   : > { %2305 = vmatpush3.msk.msra.mxu0 %vm1233_vm14, %v1264_v0  ;;  %2357 = vmatpush3.msra.mxu1 %v1595_v60  ;;  %v1801_v60 = vld [vmem:[%s3406_s4 + $0x48] sm:$0xff] }
 0x2f3   : > { %2358 = vmatprep.subr.mxu1 %v1590_v55 }
 0x2f4   : > { %2359 = vmatpush3.msra.mxu1 %v1590_v55  ;;  %v1259_v5 = vpop.permute.xlu0 %1258 }
 0x2f5   : > { %v1580_v7 = vpop.permute.xlu1 %1579  ;;  %2306 = vmatprep.subr.msk.mxu0 %vm1232_vm15, %v1259_v5  ;;  %2360 = vmatprep.subr.mxu1 %v1585_v3 }
 0x2f6   : > { %2307 = vmatpush3.msk.msra.mxu0 %vm1232_vm15, %v1259_v5  ;;  %2361 = vmatpush3.msra.mxu1 %v1585_v3 }
 0x2f7   : > { %2362 = vmatprep.subr.mxu1 %v1580_v7 }
 0x2f8   : > { %2363 = vmatpush3.msra.mxu1 %v1580_v7  ;;  %v1254_v8 = vpop.permute.xlu0 %1253  ;;  %v1803_v7 = vld [vmem:[%s3406_s4 + $0x58] sm:$0xff] }
 0x2f9   : > { %v1575_v22 = vpop.permute.xlu1 %1574  ;;  %2308 = vmatprep.subr.msk.mxu0 %vm1231_vm0, %v1254_v8 }
 0x2fa   : > { %2364 = vmatprep.subr.mxu1 %v1575_v22  ;;  %2309 = vmatpush3.msk.msra.mxu0 %vm1231_vm0, %v1254_v8 }
 0x2fb   : > { %2365 = vmatpush3.msra.mxu1 %v1575_v22 }
 0x2fc   : > { %v1249_v9 = vpop.permute.xlu0 %1248 }
 0x2fd   : > { %v1570_v13 = vpop.permute.xlu1 %1569  ;;  %2310 = vmatprep.subr.msk.mxu0 %vm1230_vm2, %v1249_v9 }
 0x2fe   : > { %2366 = vmatprep.subr.mxu1 %v1570_v13  ;;  %2311 = vmatpush3.msk.msra.mxu0 %vm1230_vm2, %v1249_v9 }
 0x2ff   : > { %2367 = vmatpush3.msra.mxu1 %v1570_v13  ;;  %2313 = vmatmul.mubr.f32.vlgmr.msra.gmra.mxu0 %v1196_v12 }
 0x300   : > { %2369 = vmatmul.mubr.f32.vlgmr.msra.gmra.mxu1 %v1196_v12  ;;  %2315 = vmatprep.mubr.f32.mxu0 %v1197_v14  ;;  %v1802_v12 = vld [vmem:[%s3406_s4 + $0x50] sm:$0xff] }
 0x301   : > { %2371 = vmatprep.mubr.f32.mxu1 %v1197_v14 }
 0x303   : > { %2316 = vmatmul.mubr.f32.gmra.mxu0 %v1198_v15 }
 0x304   : > { %2372 = vmatmul.mubr.f32.gmra.mxu1 %v1198_v15  ;;  %2318 = vmatprep.mubr.f32.mxu0 %v1199_v37 }
 0x305   : > { %2374 = vmatprep.mubr.f32.mxu1 %v1199_v37 }
 0x307   : > { %2319 = vmatmul.mubr.f32.gmra.mxu0 %v1200_v16 }
 0x308   : > { %2375 = vmatmul.mubr.f32.gmra.mxu1 %v1200_v16  ;;  %2321 = vmatprep.mubr.f32.mxu0 %v1201_v17  ;;  %v1805_v16 = vld [vmem:[%s3406_s4 + $0x68] sm:$0xff] }
 0x309   : > { %2377 = vmatprep.mubr.f32.mxu1 %v1201_v17 }
 0x30b   : > { %2322 = vmatmul.mubr.f32.gmra.mxu0 %v1202_v25 }
 0x30c   : > { %2378 = vmatmul.mubr.f32.gmra.mxu1 %v1202_v25  ;;  %2324 = vmatprep.mubr.f32.mxu0 %v1203_v18 }
 0x30d   : > { %2380 = vmatprep.mubr.f32.mxu1 %v1203_v18 }
 0x30f   : > { %2325 = vmatmul.mubr.f32.gmra.mxu0 %v1204_v10 }
 0x310   : > { %2381 = vmatmul.mubr.f32.gmra.mxu1 %v1204_v10  ;;  %2327 = vmatprep.mubr.f32.mxu0 %v1205_v20  ;;  %v1804_v10 = vld [vmem:[%s3406_s4 + $0x60] sm:$0xff] }
 0x311   : > { %2383 = vmatprep.mubr.f32.mxu1 %v1205_v20 }
 0x313   : > { %2328 = vmatmul.mubr.f32.gmra.mxu0 %v1206_v21 }
 0x314   : > { %2384 = vmatmul.mubr.f32.gmra.mxu1 %v1206_v21  ;;  %2330 = vmatprep.mubr.f32.mxu0 %v1207_v23 }
 0x315   : > { %2386 = vmatprep.mubr.f32.mxu1 %v1207_v23 }
 0x317   : > { %2331 = vmatmul.mubr.f32.gmra.mxu0 %v1208_v26 }
 0x318   : > { %2387 = vmatmul.mubr.f32.gmra.mxu1 %v1208_v26  ;;  %2333 = vmatprep.mubr.f32.mxu0 %v1209_v27 }
 0x319   : > { %2389 = vmatprep.mubr.f32.mxu1 %v1209_v27  ;;  %v1807_v27 = vld [vmem:[%s3406_s4 + $0x78] sm:$0xff] }
 0x31b   : > { %2334 = vmatmul.mubr.f32.gmra.mxu0 %v1210_v19 }
 0x31c   : > { %2390 = vmatmul.mubr.f32.gmra.mxu1 %v1210_v19 }
 0x3bf   : > { %v2314_v29 = vpop.f32.mrf.mxu0 }
 0x3c0   : > { %v2370_v30 = vpop.f32.mrf.mxu1 }
 0x3c1   : > { %v1809_v31 = vadd.f32 %v2370_v30, %v1793_v28  ;;  %v1408_v34 = vpop.f32.mrf.mxu0  ;;  %v1806_v30 = vld [vmem:[%s3406_s4 + $0x70] sm:$0xff] }
 0x3c2   : > { %v2117_v32 = vpack.c.bf16 %v2314_v29, %v1408_v34  ;;  %v1713_v33 = vpop.f32.mrf.mxu1 }
 0x3c3   : > { %1825 = vst.msk [vmem:[%s3411_s9 + $0x8] sm:$0xff] %vm870_vm1, %v1809_v31  ;;  %v1808_v1 = vadd.f32 %v1792_v24, %v1713_v33  ;;  %v2317_v36 = vpop.f32.mrf.mxu0 }
 0x3c4   : > { %2118 = vst [vmem:[#allocation10] sm:$0xff] %v2117_v32   ;;  %v2373_v38 = vpop.f32.mrf.mxu1 }
 0x3c5   : > { %1824 = vst.msk [vmem:[%s3411_s9] sm:$0xff] %vm870_vm1, %v1808_v1  ;;  %v1811_v11 = vadd.f32 %v2373_v38, %v1795_v35  ;;  %v1418_v39 = vpop.f32.mrf.mxu0 }
 0x3c6   : > { %v2122_v40 = vpack.c.bf16 %v2317_v36, %v1418_v39  ;;  %v1723_v6 = vpop.f32.mrf.mxu1 }
 0x3c7   : > { %1827 = vst.msk [vmem:[%s3411_s9 + $0x18] sm:$0xff] %vm870_vm1, %v1811_v11  ;;  %v1810_v41 = vadd.f32 %v1794_v62, %v1723_v6  ;;  %v2320_v43 = vpop.f32.mrf.mxu0 }
 0x3c8   : > { %2161 = vst [vmem:[#allocation10 + $0x8] sm:$0xff] %v2122_v40   ;;  %v2376_v44 = vpop.f32.mrf.mxu1 }
 0x3c9   : > { %1826 = vst.msk [vmem:[%s3411_s9 + $0x10] sm:$0xff] %vm870_vm1, %v1810_v41  ;;  %v1813_v47 = vadd.f32 %v2376_v44, %v1797_v42  ;;  %v1428_v48 = vpop.f32.mrf.mxu0 }
 0x3ca   : > { %v2127_v49 = vpack.c.bf16 %v2320_v43, %v1428_v48  ;;  %v1733_v50 = vpop.f32.mrf.mxu1 }
 0x3cb   : > { %1829 = vst.msk [vmem:[%s3411_s9 + $0x28] sm:$0xff] %vm870_vm1, %v1813_v47  ;;  %v1812_v46 = vadd.f32 %v1796_v45, %v1733_v50  ;;  %v2323_v52 = vpop.f32.mrf.mxu0 }
 0x3cc   : > { %2162 = vst [vmem:[#allocation10 + $0x10] sm:$0xff] %v2127_v49   ;;  %v2379_v53 = vpop.f32.mrf.mxu1 }
 0x3cd   : > { %1828 = vst.msk [vmem:[%s3411_s9 + $0x20] sm:$0xff] %vm870_vm1, %v1812_v46  ;;  %v1815_v58 = vadd.f32 %v2379_v53, %v1799_v51  ;;  %v1438_v57 = vpop.f32.mrf.mxu0 }
 0x3ce   : > { %v2132_v59 = vpack.c.bf16 %v2323_v52, %v1438_v57  ;;  %v1743_v54 = vpop.f32.mrf.mxu1 }
 0x3cf   : > { %1831 = vst.msk [vmem:[%s3411_s9 + $0x38] sm:$0xff] %vm870_vm1, %v1815_v58  ;;  %v1814_v61 = vadd.f32 %v1798_v56, %v1743_v54  ;;  %v2326_v63 = vpop.f32.mrf.mxu0 }
 0x3d0   : > { %2163 = vst [vmem:[#allocation10 + $0x18] sm:$0xff] %v2132_v59   ;;  %v2382_v55 = vpop.f32.mrf.mxu1 }
 0x3d1   : > { %1830 = vst.msk [vmem:[%s3411_s9 + $0x30] sm:$0xff] %vm870_vm1, %v1814_v61  ;;  %v1817_v0 = vadd.f32 %v2382_v55, %v1801_v60  ;;  %v1448_v3 = vpop.f32.mrf.mxu0 }
 0x3d2   : > { %v2137_v4 = vpack.c.bf16 %v2326_v63, %v1448_v3  ;;  %v1753_v5 = vpop.f32.mrf.mxu1 }
 0x3d3   : > { %1833 = vst.msk [vmem:[%s3411_s9 + $0x48] sm:$0xff] %vm870_vm1, %v1817_v0  ;;  %v1816_v8 = vadd.f32 %v1800_v2, %v1753_v5  ;;  %v2329_v22 = vpop.f32.mrf.mxu0 }
 0x3d4   : > { %2164 = vst [vmem:[#allocation10 + $0x20] sm:$0xff] %v2137_v4   ;;  %v2385_v9 = vpop.f32.mrf.mxu1 }
 0x3d5   : > { %1832 = vst.msk [vmem:[%s3411_s9 + $0x40] sm:$0xff] %vm870_vm1, %v1816_v8  ;;  %v1819_v13 = vadd.f32 %v2385_v9, %v1803_v7  ;;  %v1458_v14 = vpop.f32.mrf.mxu0 }
 0x3d6   : > { %v2142_v15 = vpack.c.bf16 %v2329_v22, %v1458_v14  ;;  %v1763_v37 = vpop.f32.mrf.mxu1 }
 0x3d7   : > { %1835 = vst.msk [vmem:[%s3411_s9 + $0x58] sm:$0xff] %vm870_vm1, %v1819_v13  ;;  %v1818_v17 = vadd.f32 %v1802_v12, %v1763_v37  ;;  %v2332_v25 = vpop.f32.mrf.mxu0 }
 0x3d8   : > { %2165 = vst [vmem:[#allocation10 + $0x28] sm:$0xff] %v2142_v15   ;;  %v2388_v18 = vpop.f32.mrf.mxu1 }
 0x3d9   : > { %1834 = vst.msk [vmem:[%s3411_s9 + $0x50] sm:$0xff] %vm870_vm1, %v1818_v17  ;;  %v1821_v20 = vadd.f32 %v2388_v18, %v1805_v16  ;;  %v1468_v21 = vpop.f32.mrf.mxu0 }
 0x3da   : > { %v2147_v23 = vpack.c.bf16 %v2332_v25, %v1468_v21  ;;  %v1773_v26 = vpop.f32.mrf.mxu1 }
 0x3db   : > { %1837 = vst.msk [vmem:[%s3411_s9 + $0x68] sm:$0xff] %vm870_vm1, %v1821_v20  ;;  %v1820_v19 = vadd.f32 %v1804_v10, %v1773_v26  ;;  %v2335_v28 = vpop.f32.mrf.mxu0 }
 0x3dc   : > { %2166 = vst [vmem:[#allocation10 + $0x30] sm:$0xff] %v2147_v23   ;;  %v2391_v29 = vpop.f32.mrf.mxu1 }
 0x3dd   : > { %1836 = vst.msk [vmem:[%s3411_s9 + $0x60] sm:$0xff] %vm870_vm1, %v1820_v19  ;;  %v1823_v24 = vadd.f32 %v2391_v29, %v1807_v27  ;;  %v1478_v31 = vpop.f32.mrf.mxu0 }
 0x3de   : > { %v2152_v34 = vpack.c.bf16 %v2335_v28, %v1478_v31  ;;  %v1783_v32 = vpop.f32.mrf.mxu1 }
 0x3df   : > { %1839 = vst.msk [vmem:[%s3411_s9 + $0x78] sm:$0xff] %vm870_vm1, %v1823_v24  ;;  %v1822_v33 = vadd.f32 %v1806_v30, %v1783_v32 }
 0x3e0   : > { %2167 = vst [vmem:[#allocation10 + $0x38] sm:$0xff] %v2152_v34  }
 0x3e1   : > { %1838 = vst.msk [vmem:[%s3411_s9 + $0x70] sm:$0xff] %vm870_vm1, %v1822_v33 }
 0x3e2 PF: > { %s2037_s26 = sshll.u32 %s2764_s13, 6  ;;  %s1853_s29 = sshll.u32 %s2844_s14, 4  ;;  %s3347_s29 = int_to_ptr.vmem [resolvable:$true] %s1853_s29 }
 0x3e3   : > { %s3344_s17 = scalar_lea.hbm %s3409_s7, %s2037_s26  ;;  %s3351_s22 = scalar_lea.sflag [#allocation6], %s346_s18 }
 0x3e4   : > { %s2581_s25 = scalar_lea.vmem %s3347_s29, 1024  ;;  %s2688_s27 = smov [#allocation9]  }
 0x3e5   : > { %p2582_p8 = scmp.ne.s32.totalorder %s3347_s29, %s2581_s25  ;;  %s2585_s23 = sshll.u32 %s2688_s27, 4  ;;  %s2586_s23 = int_to_ptr.vmem [resolvable:$false] %s2585_s23 }
 0x3e6   : > { %s2587_s21 = scalar_lea.vmem %s2586_s23, 2048  ;;  %p2588_p3 = scmp.lt.s32.totalorder %s3347_s29, %s2586_s23 }
 0x3e7   : > { %p2583_p12 = pnand %p2582_p8, %p2783_p5  ;;  %p2589_p7 = scmp.lt.s32.totalorder %s2587_s21, %s2581_s25 }
 0x3e9   : > { %p2584_p1 = pneg %p2583_p12  ;;  %p2590_p2 = por %p2589_p7, %p2588_p3 }
 0x3eb   : > { %p2591_p4 = pnand %p2590_p2, %p2584_p1 }
 0x3ed   : > { %2594 = shalt.err (!%p2591_p4)
}
 0x3ee   : > { %s2595_s18 = scalar_lea.hbm %s3344_s17, 1024  ;;  %s2599_s26 = scalar_lea.hbm %s3409_s7, 4096 }
 0x3ef   : > { %p2596_p9 = scmp.ne.s32.totalorder %s3344_s17, %s2595_s18  ;;  %p2600_p11 = scmp.lt.s32.totalorder %s3344_s17, %s3409_s7 }
 0x3f0   : > { %p2601_p13 = scmp.lt.s32.totalorder %s2599_s26, %s2595_s18 }
 0x3f1   : > { %p2597_p6 = pnand %p2596_p9, %p2783_p5 }
 0x3f2   : > { %p2602_p0 = por %p2601_p13, %p2600_p11 }
 0x3f3   : > { %p2598_p10 = pneg %p2597_p6 }
 0x3f5   : > { %p2603_p8 = pnand %p2602_p0, %p2598_p10 }
 0x3f7   : > { %2606 = shalt.err (!%p2603_p8)
}
 0x3f8   : > { %s2689_s25 = smov 64   ;;  %s2690_s27 = smov 256  }
 0x3f9   : > { %s2691_s23 = smov 4   ;;  %s2692_s21 = smov [#allocation10]  }
 0x3fa   : > { %2416 = dma.vmem_to_hbm [thread:$0]  (%p2783_p5), %s3347_s29, 1024, %s3344_s17, %s3351_s22, %s2689_s25, %s2690_s27, %s2691_s23  }
 0x3fb   : > { %s1866_s14 = sshll.u32 %s2692_s21, 4  ;;  %p3424_p1 = scmp.eq.s32.totalorder %s2764_s13, 3  ;;  %s1867_s14 = int_to_ptr.vmem [resolvable:$true] %s1866_s14 }
 0x3fc   : > { %s2607_s24 = scalar_lea.vmem %s1867_s14, 1024  ;;  %p2614_p2 = scmp.lt.s32.totalorder %s1867_s14, %s1867_s14 }
 0x3fd   : > { %p2608_p12 = scmp.ne.s32.totalorder %s1867_s14, %s2607_s24  ;;  %p2615_p4 = scmp.lt.s32.totalorder %s2607_s24, %s2607_s24 }
 0x3ff   : > { %p2609_p3 = pnand %p2608_p12, %p3424_p1  ;;  %p2616_p9 = por %p2615_p4, %p2614_p2 }
 0x401   : > { %p2610_p7 = pneg %p2609_p3 }
 0x403   : > { %p2617_p6 = pnand %p2616_p9, %p2610_p7 }
 0x405   : > { %2620 = shalt.err (!%p2617_p6)
}
 0x406   : > { %p3425_p10 = pmov %p3424_p1  ;;  %p3426_p5 = pmov %p3424_p1 }
 0x408   : > { %2418 = dma.vmem_to_hbm [thread:$0]  (%p3425_p10), %s1867_s14, 1024, %s3410_s8, [#allocation11], %s2689_s25, %s2689_s25, %s2691_s23  }
 0x409   : > { %2656 = dma.done.wait (%p3426_p5), [#allocation11], 1024   ;;  %p3427_p11 = pmov %p3424_p1 }
 0x40b   : > { %2658 = vsyncadd (%p3427_p11), [#allocation11], 4294966272 }
 0x40c PF: > { %p2439_p13 = scmp.ge.s32.totalorder %s2677_s12, 2  ;;  %s1891_s19 = sand.u32 1, %s2665_s30  }
 0x40d   : > { %p3428_p0 = scmp.ne.s32.totalorder %s3416_s20, 0  ;;  %s1892_s17 = scalar_lea.sflag [#allocation6], %s1891_s19 }
 0x40f   : > { %p2430_p8 = pnand %p2439_p13, %p3428_p0 }
 0x411   : > { %p2431_p12 = pneg %p2430_p8 }
 0x413   : > { %2660 = dma.done.wait (%p2431_p12), %s1892_s17, 1024  }
 0x414   : > { %2662 = vsyncadd (%p2431_p12), %s1892_s17, 4294966272  ;;  %s3429_s29 = sld [smem:[#allocation16_spill]]  ;;  %p23_p1 = scmp.ge.s32.totalorder %s2768_s15, 6  }
 0x415   : > { %s3430_s30 = smov %s2669_s10  ;;  %s3431_s10 = smov %s2673_s11 }
 0x416   : > { %s3433_s12 = smov %s2768_s15  ;;  %25 = sbr.rel (!%p23_p1) target bundleno = 6 (0x6), region = 116 }
 0x41a   : > { %s3432_s11 = smov %s3429_s29 }
 0x41b   :  { %1897 = vsyncpa [#allocation5], 1 }
 0x41c   :  { %1899 = vsyncpa [#allocation5 + $0x1], 1 }
 0x41d   :  { %1900 = vsyncpa [#allocation8], 1 }
 0x41e   :  { %1901 = vsyncpa [#allocation6], 1 }
 0x41f   :  { %1903 = vsyncpa [#allocation6 + $0x1], 1 }
 0x420   :  { %1904 = vsyncpa [#allocation11], 1 }

</bundles_post_ra>
